<compile_context>
chip_gen: v7x
topology: tpu7x:2x2x1
jax: 0.10.0
libtpu: 0.0.40
codegen_flags: <defaults>
</compile_context>

<pallas_src>
import functools

import jax
import jax.numpy as jnp
from jax import lax
from jax.experimental import pallas as pl
from jax.experimental.pallas import tpu as pltpu


def _ae_lstm_kernel(x_ref, wih_e_ref, whh_e_ref, b_e_ref,
                    wih_d_ref, wsum_d_ref, b_d_ref,
                    wlin_ref, blin_ref,
                    y_ref, last_ref, *, seq_len, batch_pad, hidden_size):
    """Encoder LSTM -> decoder LSTM (reverse fill) -> Linear, one invocation."""
    H, T, BP = hidden_size, seq_len, batch_pad

    # ---- Hoist weight / bias reads out of the recurrences (vreg-resident) ----
    wih_e = wih_e_ref[...]                                    # (F, 4H)
    whh_e = whh_e_ref[...]                                    # (H, 4H)
    wih_d = wih_d_ref[...]                                    # (H, 4H)
    wsum_d = wsum_d_ref[...]                                  # (H, 4H) = (Wih_d+Whh_d)^T
    b_d = jnp.broadcast_to(b_d_ref[...], (BP, 4 * H))         # broadcast once, not per step
    wlin = wlin_ref[...]                                      # (H, F)
    blin = blin_ref[...]                                      # (1, F)

    # lane mask selecting the candidate ('g') gate columns of the fused gate vec
    lane = lax.broadcasted_iota(jnp.int32, (1, 4 * H), 1)
    is_g = (lane >= 2 * H) & (lane < 3 * H)

    def gates(g, c):
        # ONE full-width sigmoid pass; tanh on g-lanes via tanh(x)=2*sigmoid(2x)-1
        # (pre-scale by 2 with the lane mask, fix up with 2*s-1 on the VPU).
        g2 = jnp.where(is_g, 2.0 * g, g)
        s = jax.nn.sigmoid(g2)
        act = jnp.where(is_g, 2.0 * s - 1.0, s)
        i_g = act[:, 0 * H:1 * H]
        f_g = act[:, 1 * H:2 * H]
        g_g = act[:, 2 * H:3 * H]
        o_g = act[:, 3 * H:4 * H]
        c_new = f_g * c + i_g * g_g
        h_new = o_g * jnp.tanh(c_new)
        return h_new, c_new

    # ---- Encoder ----
    # Input projection hoisted off the serialized h-chain: one batched matmul,
    # kept as a vreg-resident value (no VMEM scratch round-trip).
    gx = (jnp.dot(x_ref[...], wih_e, preferred_element_type=jnp.float32)
          + b_e_ref[...])                                     # (T*BP, 4H)

    zeros = jnp.zeros((BP, H), jnp.float32)
    h, c = zeros, zeros
    for t in range(T):                                        # static trace-time unroll
        g = gx[t * BP:(t + 1) * BP, :] + jnp.dot(
            h, whh_e, preferred_element_type=jnp.float32)
        h, c = gates(g, c)
    h_enc = h

    # ---- Decoder ----
    # Step 0: h == c == 0  ->  g = h_enc @ Wih_d + b_d  (Whh_d term vanishes).
    g0 = jnp.dot(h_enc, wih_d, preferred_element_type=jnp.float32) + b_d
    hd, cd = gates(g0, zeros)

    hs = [None] * T                                           # vreg-resident h stack
    hs[T - 1] = hd

    # Steps 1..T-1: decoder input == its own previous hidden state, so the two
    # matmuls fuse exactly: g = h @ (Wih_d + Whh_d) + b_d.  Reverse fill.
    for step in range(1, T):                                  # static trace-time unroll
        g = jnp.dot(hd, wsum_d, preferred_element_type=jnp.float32) + b_d
        hd, cd = gates(g, cd)
        hs[T - 1 - step] = hd

    h_stack = jnp.concatenate(hs, axis=0)                     # (T*BP, H), in vregs

    # ---- Linear head: one batched matmul + one hoisted store each ----
    y_ref[...] = (jnp.dot(h_stack, wlin, preferred_element_type=jnp.float32)
                  + blin).astype(y_ref.dtype)
    last_ref[...] = hd.astype(last_ref.dtype)


def init_params(key, hidden_size, nb_feature):
    """Deterministic init matching PyTorch's uniform(-1/sqrt(H), 1/sqrt(H))."""
    H, F = hidden_size, nb_feature
    bound = 1.0 / float(H) ** 0.5
    keys = jax.random.split(key, 10)
    u = lambda kk, shape: jax.random.uniform(kk, shape, jnp.float32, -bound, bound)
    return dict(
        wih_e=u(keys[0], (4 * H, F)),   # encoder LSTM weight_ih_l0
        whh_e=u(keys[1], (4 * H, H)),   # encoder LSTM weight_hh_l0
        bih_e=u(keys[2], (4 * H,)),
        bhh_e=u(keys[3], (4 * H,)),
        wih_d=u(keys[4], (4 * H, H)),   # decoder LSTM (input_size == hidden_size)
        whh_d=u(keys[5], (4 * H, H)),
        bih_d=u(keys[6], (4 * H,)),
        bhh_d=u(keys[7], (4 * H,)),
        wlin=u(keys[8], (F, H)),        # Linear(H -> F) weight
        blin=u(keys[9], (F,)),          # Linear bias
    )


def ae_lstm_forward(x, params):
    """x: (B, T, F) float32. Returns (y: (B, T, F), last_dec: (B, H))."""
    B, T, F = x.shape
    H = params["whh_e"].shape[1]
    BP = -(-B // 8) * 8                 # pad batch to a full f32 sublane tile

    x_tbf = jnp.transpose(x, (1, 0, 2)).astype(jnp.float32)       # (T, B, F)
    x_pad = jnp.pad(x_tbf, ((0, 0), (0, BP - B), (0, 0)))          # (T, BP, F)
    x_flat = x_pad.reshape(T * BP, F)                              # (T*BP, F)

    args = (
        x_flat,
        params["wih_e"].T,                                         # (F, 4H)
        params["whh_e"].T,                                         # (H, 4H)
        (params["bih_e"] + params["bhh_e"]).reshape(1, 4 * H),
        params["wih_d"].T,                                         # (H, 4H)
        (params["wih_d"] + params["whh_d"]).T,                     # (H, 4H) fused decoder W
        (params["bih_d"] + params["bhh_d"]).reshape(1, 4 * H),
        params["wlin"].T,                                          # (H, F)
        params["blin"].reshape(1, F),
    )

    vmem = pl.BlockSpec(memory_space=pltpu.MemorySpace.VMEM)
    kernel = functools.partial(_ae_lstm_kernel, seq_len=T, batch_pad=BP,
                               hidden_size=H)
    y_flat, last = pl.pallas_call(
        kernel,
        out_shape=(jax.ShapeDtypeStruct((T * BP, F), jnp.float32),
                   jax.ShapeDtypeStruct((BP, H), jnp.float32)),
        in_specs=[vmem] * len(args),
        out_specs=(vmem, vmem),
    )(*args)

    y = y_flat.reshape(T, BP, F)[:, :B, :].transpose(1, 0, 2)       # (B, T, F)
    return y, last[:B]


def reference_forward(x, params):
    """Pure-JAX reference mirroring the PyTorch forward, for validation."""
    B, T, F = x.shape
    H = params["whh_e"].shape[1]

    def cell(x_t, h, c, wih, whh, b):
        g = x_t @ wih.T + h @ whh.T + b
        i = jax.nn.sigmoid(g[:, :H])
        f = jax.nn.sigmoid(g[:, H:2 * H])
        gg = jnp.tanh(g[:, 2 * H:3 * H])
        o = jax.nn.sigmoid(g[:, 3 * H:])
        c = f * c + i * gg
        h = o * jnp.tanh(c)
        return h, c

    h = c = jnp.zeros((B, H), jnp.float32)
    be = params["bih_e"] + params["bhh_e"]
    for t in range(T):
        h, c = cell(x[:, t, :], h, c, params["wih_e"], params["whh_e"], be)
    h_enc = h

    bd = params["bih_d"] + params["bhh_d"]
    hd = cd = jnp.zeros((B, H), jnp.float32)
    xd = h_enc
    outs = [None] * T
    for i in range(T - 1, -1, -1):
        hd, cd = cell(xd, hd, cd, params["wih_d"], params["whh_d"], bd)
        xd = hd
        outs[i] = hd
    out = jnp.stack(outs, axis=1)                      # (B, T, H)
    y = out @ params["wlin"].T + params["blin"]        # (B, T, F)
    return y, xd


if __name__ == "__main__":
    B, T, F, H = 2, 8, 4, 32
    key = jax.random.PRNGKey(0)
    kx, kp = jax.random.split(key)
    x = jax.random.normal(kx, (B, T, F), jnp.float32)
    params = init_params(kp, H, F)

    y, last = ae_lstm_forward(x, params)
    jax.block_until_ready((y, last))

    y_ref, last_ref = reference_forward(x, params)
    assert y.shape == (B, T, F) and last.shape == (B, H)
    # Fused decoder weight, hoisted projection and the sigmoid-based tanh change
    # f32 rounding order vs the reference (same math, different rounding).
    assert jnp.allclose(y, y_ref, atol=1e-4, rtol=1e-4)
    assert jnp.allclose(last, last_ref, atol=1e-4, rtol=1e-4)
    print("KERNEL_OK")
</pallas_src>

<mosaic_0001>
module attributes {stable_mosaic.version = 11 : i64} {
  func.func @_ae_lstm_kernel(%arg0: memref<64x4xf32, #tpu.memory_space<vmem>>, %arg1: memref<4x128xf32, #tpu.memory_space<vmem>>, %arg2: memref<32x128xf32, #tpu.memory_space<vmem>>, %arg3: memref<1x128xf32, #tpu.memory_space<vmem>>, %arg4: memref<32x128xf32, #tpu.memory_space<vmem>>, %arg5: memref<32x128xf32, #tpu.memory_space<vmem>>, %arg6: memref<1x128xf32, #tpu.memory_space<vmem>>, %arg7: memref<32x4xf32, #tpu.memory_space<vmem>>, %arg8: memref<1x4xf32, #tpu.memory_space<vmem>>, %arg9: memref<64x4xf32, #tpu.memory_space<vmem>>, %arg10: memref<8x32xf32, #tpu.memory_space<vmem>>) attributes {dimension_semantics = [], scalar_prefetch = 0 : i64, scratch_operands = 0 : i64, tpu.core_type = #tpu.core_type<tc>} {
    %c0 = arith.constant 0 : index
    %c0_0 = arith.constant 0 : index
    %0 = vector.load %arg1[%c0, %c0_0] : memref<4x128xf32, #tpu.memory_space<vmem>>, vector<4x128xf32>
    %c0_1 = arith.constant 0 : index
    %c0_2 = arith.constant 0 : index
    %1 = vector.load %arg2[%c0_1, %c0_2] : memref<32x128xf32, #tpu.memory_space<vmem>>, vector<32x128xf32>
    %c0_3 = arith.constant 0 : index
    %c0_4 = arith.constant 0 : index
    %2 = vector.load %arg4[%c0_3, %c0_4] : memref<32x128xf32, #tpu.memory_space<vmem>>, vector<32x128xf32>
    %c0_5 = arith.constant 0 : index
    %c0_6 = arith.constant 0 : index
    %3 = vector.load %arg5[%c0_5, %c0_6] : memref<32x128xf32, #tpu.memory_space<vmem>>, vector<32x128xf32>
    %c0_7 = arith.constant 0 : index
    %c0_8 = arith.constant 0 : index
    %4 = vector.load %arg6[%c0_7, %c0_8] : memref<1x128xf32, #tpu.memory_space<vmem>>, vector<1x128xf32>
    %5 = vector.shape_cast %4 : vector<1x128xf32> to vector<1x128xf32>
    %6 = vector.broadcast %5 : vector<1x128xf32> to vector<8x128xf32>
    %c0_9 = arith.constant 0 : index
    %c0_10 = arith.constant 0 : index
    %7 = vector.load %arg7[%c0_9, %c0_10] : memref<32x4xf32, #tpu.memory_space<vmem>>, vector<32x4xf32>
    %c0_11 = arith.constant 0 : index
    %c0_12 = arith.constant 0 : index
    %8 = vector.load %arg8[%c0_11, %c0_12] : memref<1x4xf32, #tpu.memory_space<vmem>>, vector<1x4xf32>
    %9 = tpu.iota {dimensions = array<i32: 1>} : vector<1x128xi32>
    %c64_i32 = arith.constant 64 : i32
    %10 = vector.broadcast %c64_i32 : i32 to vector<1x128xi32>
    %11 = arith.cmpi sge, %9, %10 : vector<1x128xi32>
    %c96_i32 = arith.constant 96 : i32
    %12 = vector.broadcast %c96_i32 : i32 to vector<1x128xi32>
    %13 = arith.cmpi slt, %9, %12 : vector<1x128xi32>
    %14 = arith.andi %11, %13 : vector<1x128xi1>
    %c0_13 = arith.constant 0 : index
    %c0_14 = arith.constant 0 : index
    %15 = vector.load %arg0[%c0_13, %c0_14] : memref<64x4xf32, #tpu.memory_space<vmem>>, vector<64x4xf32>
    %cst = arith.constant dense<0.000000e+00> : vector<64x128xf32>
    %16 = tpu.matmul %15, %0, %cst {dimension_numbers = #tpu.dot_dimension_numbers<[1], [0], [0], [1], [0, 0, 1, 1], [], []>} : vector<64x4xf32>, vector<4x128xf32>, vector<64x128xf32> -> vector<64x128xf32>
    %c0_15 = arith.constant 0 : index
    %c0_16 = arith.constant 0 : index
    %17 = vector.load %arg3[%c0_15, %c0_16] : memref<1x128xf32, #tpu.memory_space<vmem>>, vector<1x128xf32>
    %18 = vector.broadcast %17 : vector<1x128xf32> to vector<64x128xf32>
    %19 = arith.addf %16, %18 : vector<64x128xf32>
    %cst_17 = arith.constant 0.000000e+00 : f32
    %20 = vector.broadcast %cst_17 : f32 to vector<8x32xf32>
    %21 = vector.extract_strided_slice %19 {offsets = [0, 0], sizes = [8, 128], strides = [1, 1]} : vector<64x128xf32> to vector<8x128xf32>
    %cst_18 = arith.constant dense<0.000000e+00> : vector<8x128xf32>
    %22 = tpu.matmul %20, %1, %cst_18 {dimension_numbers = #tpu.dot_dimension_numbers<[1], [0], [0], [1], [0, 0, 1, 1], [], []>} : vector<8x32xf32>, vector<32x128xf32>, vector<8x128xf32> -> vector<8x128xf32>
    %23 = arith.addf %21, %22 : vector<8x128xf32>
    %cst_19 = arith.constant 2.000000e+00 : f32
    %24 = vector.broadcast %cst_19 : f32 to vector<8x128xf32>
    %25 = arith.mulf %24, %23 : vector<8x128xf32>
    %26 = vector.shape_cast %14 : vector<1x128xi1> to vector<1x128xi1>
    %27 = vector.broadcast %26 : vector<1x128xi1> to vector<8x128xi1>
    %28 = arith.select %27, %25, %23 : vector<8x128xi1>, vector<8x128xf32>
    %29 = arith.negf %28 : vector<8x128xf32>
    %30 = math.exp %29 : vector<8x128xf32>
    %cst_20 = arith.constant 1.000000e+00 : f32
    %31 = vector.broadcast %cst_20 : f32 to vector<8x128xf32>
    %32 = arith.addf %31, %30 : vector<8x128xf32>
    %33 = arith.divf %31, %32 : vector<8x128xf32>
    %cst_21 = arith.constant 2.000000e+00 : f32
    %34 = vector.broadcast %cst_21 : f32 to vector<8x128xf32>
    %35 = arith.mulf %34, %33 : vector<8x128xf32>
    %cst_22 = arith.constant 1.000000e+00 : f32
    %36 = vector.broadcast %cst_22 : f32 to vector<8x128xf32>
    %37 = arith.subf %35, %36 : vector<8x128xf32>
    %38 = vector.shape_cast %14 : vector<1x128xi1> to vector<1x128xi1>
    %39 = vector.broadcast %38 : vector<1x128xi1> to vector<8x128xi1>
    %40 = arith.select %39, %37, %33 : vector<8x128xi1>, vector<8x128xf32>
    %41 = vector.extract_strided_slice %40 {offsets = [0, 0], sizes = [8, 32], strides = [1, 1]} : vector<8x128xf32> to vector<8x32xf32>
    %42 = vector.extract_strided_slice %40 {offsets = [0, 32], sizes = [8, 32], strides = [1, 1]} : vector<8x128xf32> to vector<8x32xf32>
    %43 = vector.extract_strided_slice %40 {offsets = [0, 64], sizes = [8, 32], strides = [1, 1]} : vector<8x128xf32> to vector<8x32xf32>
    %44 = vector.extract_strided_slice %40 {offsets = [0, 96], sizes = [8, 32], strides = [1, 1]} : vector<8x128xf32> to vector<8x32xf32>
    %45 = arith.mulf %42, %20 : vector<8x32xf32>
    %46 = arith.mulf %41, %43 : vector<8x32xf32>
    %47 = arith.addf %45, %46 : vector<8x32xf32>
    %48 = math.tanh %47 : vector<8x32xf32>
    %49 = arith.mulf %44, %48 : vector<8x32xf32>
    %50 = vector.extract_strided_slice %19 {offsets = [8, 0], sizes = [8, 128], strides = [1, 1]} : vector<64x128xf32> to vector<8x128xf32>
    %cst_23 = arith.constant dense<0.000000e+00> : vector<8x128xf32>
    %51 = tpu.matmul %49, %1, %cst_23 {dimension_numbers = #tpu.dot_dimension_numbers<[1], [0], [0], [1], [0, 0, 1, 1], [], []>} : vector<8x32xf32>, vector<32x128xf32>, vector<8x128xf32> -> vector<8x128xf32>
    %52 = arith.addf %50, %51 : vector<8x128xf32>
    %cst_24 = arith.constant 2.000000e+00 : f32
    %53 = vector.broadcast %cst_24 : f32 to vector<8x128xf32>
    %54 = arith.mulf %53, %52 : vector<8x128xf32>
    %55 = vector.shape_cast %14 : vector<1x128xi1> to vector<1x128xi1>
    %56 = vector.broadcast %55 : vector<1x128xi1> to vector<8x128xi1>
    %57 = arith.select %56, %54, %52 : vector<8x128xi1>, vector<8x128xf32>
    %58 = arith.negf %57 : vector<8x128xf32>
    %59 = math.exp %58 : vector<8x128xf32>
    %cst_25 = arith.constant 1.000000e+00 : f32
    %60 = vector.broadcast %cst_25 : f32 to vector<8x128xf32>
    %61 = arith.addf %60, %59 : vector<8x128xf32>
    %62 = arith.divf %60, %61 : vector<8x128xf32>
    %cst_26 = arith.constant 2.000000e+00 : f32
    %63 = vector.broadcast %cst_26 : f32 to vector<8x128xf32>
    %64 = arith.mulf %63, %62 : vector<8x128xf32>
    %cst_27 = arith.constant 1.000000e+00 : f32
    %65 = vector.broadcast %cst_27 : f32 to vector<8x128xf32>
    %66 = arith.subf %64, %65 : vector<8x128xf32>
    %67 = vector.shape_cast %14 : vector<1x128xi1> to vector<1x128xi1>
    %68 = vector.broadcast %67 : vector<1x128xi1> to vector<8x128xi1>
    %69 = arith.select %68, %66, %62 : vector<8x128xi1>, vector<8x128xf32>
    %70 = vector.extract_strided_slice %69 {offsets = [0, 0], sizes = [8, 32], strides = [1, 1]} : vector<8x128xf32> to vector<8x32xf32>
    %71 = vector.extract_strided_slice %69 {offsets = [0, 32], sizes = [8, 32], strides = [1, 1]} : vector<8x128xf32> to vector<8x32xf32>
    %72 = vector.extract_strided_slice %69 {offsets = [0, 64], sizes = [8, 32], strides = [1, 1]} : vector<8x128xf32> to vector<8x32xf32>
    %73 = vector.extract_strided_slice %69 {offsets = [0, 96], sizes = [8, 32], strides = [1, 1]} : vector<8x128xf32> to vector<8x32xf32>
    %74 = arith.mulf %71, %47 : vector<8x32xf32>
    %75 = arith.mulf %70, %72 : vector<8x32xf32>
    %76 = arith.addf %74, %75 : vector<8x32xf32>
    %77 = math.tanh %76 : vector<8x32xf32>
    %78 = arith.mulf %73, %77 : vector<8x32xf32>
    %79 = vector.extract_strided_slice %19 {offsets = [16, 0], sizes = [8, 128], strides = [1, 1]} : vector<64x128xf32> to vector<8x128xf32>
    %cst_28 = arith.constant dense<0.000000e+00> : vector<8x128xf32>
    %80 = tpu.matmul %78, %1, %cst_28 {dimension_numbers = #tpu.dot_dimension_numbers<[1], [0], [0], [1], [0, 0, 1, 1], [], []>} : vector<8x32xf32>, vector<32x128xf32>, vector<8x128xf32> -> vector<8x128xf32>
    %81 = arith.addf %79, %80 : vector<8x128xf32>
    %cst_29 = arith.constant 2.000000e+00 : f32
    %82 = vector.broadcast %cst_29 : f32 to vector<8x128xf32>
    %83 = arith.mulf %82, %81 : vector<8x128xf32>
    %84 = vector.shape_cast %14 : vector<1x128xi1> to vector<1x128xi1>
    %85 = vector.broadcast %84 : vector<1x128xi1> to vector<8x128xi1>
    %86 = arith.select %85, %83, %81 : vector<8x128xi1>, vector<8x128xf32>
    %87 = arith.negf %86 : vector<8x128xf32>
    %88 = math.exp %87 : vector<8x128xf32>
    %cst_30 = arith.constant 1.000000e+00 : f32
    %89 = vector.broadcast %cst_30 : f32 to vector<8x128xf32>
    %90 = arith.addf %89, %88 : vector<8x128xf32>
    %91 = arith.divf %89, %90 : vector<8x128xf32>
    %cst_31 = arith.constant 2.000000e+00 : f32
    %92 = vector.broadcast %cst_31 : f32 to vector<8x128xf32>
    %93 = arith.mulf %92, %91 : vector<8x128xf32>
    %cst_32 = arith.constant 1.000000e+00 : f32
    %94 = vector.broadcast %cst_32 : f32 to vector<8x128xf32>
    %95 = arith.subf %93, %94 : vector<8x128xf32>
    %96 = vector.shape_cast %14 : vector<1x128xi1> to vector<1x128xi1>
    %97 = vector.broadcast %96 : vector<1x128xi1> to vector<8x128xi1>
    %98 = arith.select %97, %95, %91 : vector<8x128xi1>, vector<8x128xf32>
    %99 = vector.extract_strided_slice %98 {offsets = [0, 0], sizes = [8, 32], strides = [1, 1]} : vector<8x128xf32> to vector<8x32xf32>
    %100 = vector.extract_strided_slice %98 {offsets = [0, 32], sizes = [8, 32], strides = [1, 1]} : vector<8x128xf32> to vector<8x32xf32>
    %101 = vector.extract_strided_slice %98 {offsets = [0, 64], sizes = [8, 32], strides = [1, 1]} : vector<8x128xf32> to vector<8x32xf32>
    %102 = vector.extract_strided_slice %98 {offsets = [0, 96], sizes = [8, 32], strides = [1, 1]} : vector<8x128xf32> to vector<8x32xf32>
    %103 = arith.mulf %100, %76 : vector<8x32xf32>
    %104 = arith.mulf %99, %101 : vector<8x32xf32>
    %105 = arith.addf %103, %104 : vector<8x32xf32>
    %106 = math.tanh %105 : vector<8x32xf32>
    %107 = arith.mulf %102, %106 : vector<8x32xf32>
    %108 = vector.extract_strided_slice %19 {offsets = [24, 0], sizes = [8, 128], strides = [1, 1]} : vector<64x128xf32> to vector<8x128xf32>
    %cst_33 = arith.constant dense<0.000000e+00> : vector<8x128xf32>
    %109 = tpu.matmul %107, %1, %cst_33 {dimension_numbers = #tpu.dot_dimension_numbers<[1], [0], [0], [1], [0, 0, 1, 1], [], []>} : vector<8x32xf32>, vector<32x128xf32>, vector<8x128xf32> -> vector<8x128xf32>
    %110 = arith.addf %108, %109 : vector<8x128xf32>
    %cst_34 = arith.constant 2.000000e+00 : f32
    %111 = vector.broadcast %cst_34 : f32 to vector<8x128xf32>
    %112 = arith.mulf %111, %110 : vector<8x128xf32>
    %113 = vector.shape_cast %14 : vector<1x128xi1> to vector<1x128xi1>
    %114 = vector.broadcast %113 : vector<1x128xi1> to vector<8x128xi1>
    %115 = arith.select %114, %112, %110 : vector<8x128xi1>, vector<8x128xf32>
    %116 = arith.negf %115 : vector<8x128xf32>
    %117 = math.exp %116 : vector<8x128xf32>
    %cst_35 = arith.constant 1.000000e+00 : f32
    %118 = vector.broadcast %cst_35 : f32 to vector<8x128xf32>
    %119 = arith.addf %118, %117 : vector<8x128xf32>
    %120 = arith.divf %118, %119 : vector<8x128xf32>
    %cst_36 = arith.constant 2.000000e+00 : f32
    %121 = vector.broadcast %cst_36 : f32 to vector<8x128xf32>
    %122 = arith.mulf %121, %120 : vector<8x128xf32>
    %cst_37 = arith.constant 1.000000e+00 : f32
    %123 = vector.broadcast %cst_37 : f32 to vector<8x128xf32>
    %124 = arith.subf %122, %123 : vector<8x128xf32>
    %125 = vector.shape_cast %14 : vector<1x128xi1> to vector<1x128xi1>
    %126 = vector.broadcast %125 : vector<1x128xi1> to vector<8x128xi1>
    %127 = arith.select %126, %124, %120 : vector<8x128xi1>, vector<8x128xf32>
    %128 = vector.extract_strided_slice %127 {offsets = [0, 0], sizes = [8, 32], strides = [1, 1]} : vector<8x128xf32> to vector<8x32xf32>
    %129 = vector.extract_strided_slice %127 {offsets = [0, 32], sizes = [8, 32], strides = [1, 1]} : vector<8x128xf32> to vector<8x32xf32>
    %130 = vector.extract_strided_slice %127 {offsets = [0, 64], sizes = [8, 32], strides = [1, 1]} : vector<8x128xf32> to vector<8x32xf32>
    %131 = vector.extract_strided_slice %127 {offsets = [0, 96], sizes = [8, 32], strides = [1, 1]} : vector<8x128xf32> to vector<8x32xf32>
    %132 = arith.mulf %129, %105 : vector<8x32xf32>
    %133 = arith.mulf %128, %130 : vector<8x32xf32>
    %134 = arith.addf %132, %133 : vector<8x32xf32>
    %135 = math.tanh %134 : vector<8x32xf32>
    %136 = arith.mulf %131, %135 : vector<8x32xf32>
    %137 = vector.extract_strided_slice %19 {offsets = [32, 0], sizes = [8, 128], strides = [1, 1]} : vector<64x128xf32> to vector<8x128xf32>
    %cst_38 = arith.constant dense<0.000000e+00> : vector<8x128xf32>
    %138 = tpu.matmul %136, %1, %cst_38 {dimension_numbers = #tpu.dot_dimension_numbers<[1], [0], [0], [1], [0, 0, 1, 1], [], []>} : vector<8x32xf32>, vector<32x128xf32>, vector<8x128xf32> -> vector<8x128xf32>
    %139 = arith.addf %137, %138 : vector<8x128xf32>
    %cst_39 = arith.constant 2.000000e+00 : f32
    %140 = vector.broadcast %cst_39 : f32 to vector<8x128xf32>
    %141 = arith.mulf %140, %139 : vector<8x128xf32>
    %142 = vector.shape_cast %14 : vector<1x128xi1> to vector<1x128xi1>
    %143 = vector.broadcast %142 : vector<1x128xi1> to vector<8x128xi1>
    %144 = arith.select %143, %141, %139 : vector<8x128xi1>, vector<8x128xf32>
    %145 = arith.negf %144 : vector<8x128xf32>
    %146 = math.exp %145 : vector<8x128xf32>
    %cst_40 = arith.constant 1.000000e+00 : f32
    %147 = vector.broadcast %cst_40 : f32 to vector<8x128xf32>
    %148 = arith.addf %147, %146 : vector<8x128xf32>
    %149 = arith.divf %147, %148 : vector<8x128xf32>
    %cst_41 = arith.constant 2.000000e+00 : f32
    %150 = vector.broadcast %cst_41 : f32 to vector<8x128xf32>
    %151 = arith.mulf %150, %149 : vector<8x128xf32>
    %cst_42 = arith.constant 1.000000e+00 : f32
    %152 = vector.broadcast %cst_42 : f32 to vector<8x128xf32>
    %153 = arith.subf %151, %152 : vector<8x128xf32>
    %154 = vector.shape_cast %14 : vector<1x128xi1> to vector<1x128xi1>
    %155 = vector.broadcast %154 : vector<1x128xi1> to vector<8x128xi1>
    %156 = arith.select %155, %153, %149 : vector<8x128xi1>, vector<8x128xf32>
    %157 = vector.extract_strided_slice %156 {offsets = [0, 0], sizes = [8, 32], strides = [1, 1]} : vector<8x128xf32> to vector<8x32xf32>
    %158 = vector.extract_strided_slice %156 {offsets = [0, 32], sizes = [8, 32], strides = [1, 1]} : vector<8x128xf32> to vector<8x32xf32>
    %159 = vector.extract_strided_slice %156 {offsets = [0, 64], sizes = [8, 32], strides = [1, 1]} : vector<8x128xf32> to vector<8x32xf32>
    %160 = vector.extract_strided_slice %156 {offsets = [0, 96], sizes = [8, 32], strides = [1, 1]} : vector<8x128xf32> to vector<8x32xf32>
    %161 = arith.mulf %158, %134 : vector<8x32xf32>
    %162 = arith.mulf %157, %159 : vector<8x32xf32>
    %163 = arith.addf %161, %162 : vector<8x32xf32>
    %164 = math.tanh %163 : vector<8x32xf32>
    %165 = arith.mulf %160, %164 : vector<8x32xf32>
    %166 = vector.extract_strided_slice %19 {offsets = [40, 0], sizes = [8, 128], strides = [1, 1]} : vector<64x128xf32> to vector<8x128xf32>
    %cst_43 = arith.constant dense<0.000000e+00> : vector<8x128xf32>
    %167 = tpu.matmul %165, %1, %cst_43 {dimension_numbers = #tpu.dot_dimension_numbers<[1], [0], [0], [1], [0, 0, 1, 1], [], []>} : vector<8x32xf32>, vector<32x128xf32>, vector<8x128xf32> -> vector<8x128xf32>
    %168 = arith.addf %166, %167 : vector<8x128xf32>
    %cst_44 = arith.constant 2.000000e+00 : f32
    %169 = vector.broadcast %cst_44 : f32 to vector<8x128xf32>
    %170 = arith.mulf %169, %168 : vector<8x128xf32>
    %171 = vector.shape_cast %14 : vector<1x128xi1> to vector<1x128xi1>
    %172 = vector.broadcast %171 : vector<1x128xi1> to vector<8x128xi1>
    %173 = arith.select %172, %170, %168 : vector<8x128xi1>, vector<8x128xf32>
    %174 = arith.negf %173 : vector<8x128xf32>
    %175 = math.exp %174 : vector<8x128xf32>
    %cst_45 = arith.constant 1.000000e+00 : f32
    %176 = vector.broadcast %cst_45 : f32 to vector<8x128xf32>
    %177 = arith.addf %176, %175 : vector<8x128xf32>
    %178 = arith.divf %176, %177 : vector<8x128xf32>
    %cst_46 = arith.constant 2.000000e+00 : f32
    %179 = vector.broadcast %cst_46 : f32 to vector<8x128xf32>
    %180 = arith.mulf %179, %178 : vector<8x128xf32>
    %cst_47 = arith.constant 1.000000e+00 : f32
    %181 = vector.broadcast %cst_47 : f32 to vector<8x128xf32>
    %182 = arith.subf %180, %181 : vector<8x128xf32>
    %183 = vector.shape_cast %14 : vector<1x128xi1> to vector<1x128xi1>
    %184 = vector.broadcast %183 : vector<1x128xi1> to vector<8x128xi1>
    %185 = arith.select %184, %182, %178 : vector<8x128xi1>, vector<8x128xf32>
    %186 = vector.extract_strided_slice %185 {offsets = [0, 0], sizes = [8, 32], strides = [1, 1]} : vector<8x128xf32> to vector<8x32xf32>
    %187 = vector.extract_strided_slice %185 {offsets = [0, 32], sizes = [8, 32], strides = [1, 1]} : vector<8x128xf32> to vector<8x32xf32>
    %188 = vector.extract_strided_slice %185 {offsets = [0, 64], sizes = [8, 32], strides = [1, 1]} : vector<8x128xf32> to vector<8x32xf32>
    %189 = vector.extract_strided_slice %185 {offsets = [0, 96], sizes = [8, 32], strides = [1, 1]} : vector<8x128xf32> to vector<8x32xf32>
    %190 = arith.mulf %187, %163 : vector<8x32xf32>
    %191 = arith.mulf %186, %188 : vector<8x32xf32>
    %192 = arith.addf %190, %191 : vector<8x32xf32>
    %193 = math.tanh %192 : vector<8x32xf32>
    %194 = arith.mulf %189, %193 : vector<8x32xf32>
    %195 = vector.extract_strided_slice %19 {offsets = [48, 0], sizes = [8, 128], strides = [1, 1]} : vector<64x128xf32> to vector<8x128xf32>
    %cst_48 = arith.constant dense<0.000000e+00> : vector<8x128xf32>
    %196 = tpu.matmul %194, %1, %cst_48 {dimension_numbers = #tpu.dot_dimension_numbers<[1], [0], [0], [1], [0, 0, 1, 1], [], []>} : vector<8x32xf32>, vector<32x128xf32>, vector<8x128xf32> -> vector<8x128xf32>
    %197 = arith.addf %195, %196 : vector<8x128xf32>
    %cst_49 = arith.constant 2.000000e+00 : f32
    %198 = vector.broadcast %cst_49 : f32 to vector<8x128xf32>
    %199 = arith.mulf %198, %197 : vector<8x128xf32>
    %200 = vector.shape_cast %14 : vector<1x128xi1> to vector<1x128xi1>
    %201 = vector.broadcast %200 : vector<1x128xi1> to vector<8x128xi1>
    %202 = arith.select %201, %199, %197 : vector<8x128xi1>, vector<8x128xf32>
    %203 = arith.negf %202 : vector<8x128xf32>
    %204 = math.exp %203 : vector<8x128xf32>
    %cst_50 = arith.constant 1.000000e+00 : f32
    %205 = vector.broadcast %cst_50 : f32 to vector<8x128xf32>
    %206 = arith.addf %205, %204 : vector<8x128xf32>
    %207 = arith.divf %205, %206 : vector<8x128xf32>
    %cst_51 = arith.constant 2.000000e+00 : f32
    %208 = vector.broadcast %cst_51 : f32 to vector<8x128xf32>
    %209 = arith.mulf %208, %207 : vector<8x128xf32>
    %cst_52 = arith.constant 1.000000e+00 : f32
    %210 = vector.broadcast %cst_52 : f32 to vector<8x128xf32>
    %211 = arith.subf %209, %210 : vector<8x128xf32>
    %212 = vector.shape_cast %14 : vector<1x128xi1> to vector<1x128xi1>
    %213 = vector.broadcast %212 : vector<1x128xi1> to vector<8x128xi1>
    %214 = arith.select %213, %211, %207 : vector<8x128xi1>, vector<8x128xf32>
    %215 = vector.extract_strided_slice %214 {offsets = [0, 0], sizes = [8, 32], strides = [1, 1]} : vector<8x128xf32> to vector<8x32xf32>
    %216 = vector.extract_strided_slice %214 {offsets = [0, 32], sizes = [8, 32], strides = [1, 1]} : vector<8x128xf32> to vector<8x32xf32>
    %217 = vector.extract_strided_slice %214 {offsets = [0, 64], sizes = [8, 32], strides = [1, 1]} : vector<8x128xf32> to vector<8x32xf32>
    %218 = vector.extract_strided_slice %214 {offsets = [0, 96], sizes = [8, 32], strides = [1, 1]} : vector<8x128xf32> to vector<8x32xf32>
    %219 = arith.mulf %216, %192 : vector<8x32xf32>
    %220 = arith.mulf %215, %217 : vector<8x32xf32>
    %221 = arith.addf %219, %220 : vector<8x32xf32>
    %222 = math.tanh %221 : vector<8x32xf32>
    %223 = arith.mulf %218, %222 : vector<8x32xf32>
    %224 = vector.extract_strided_slice %19 {offsets = [56, 0], sizes = [8, 128], strides = [1, 1]} : vector<64x128xf32> to vector<8x128xf32>
    %cst_53 = arith.constant dense<0.000000e+00> : vector<8x128xf32>
    %225 = tpu.matmul %223, %1, %cst_53 {dimension_numbers = #tpu.dot_dimension_numbers<[1], [0], [0], [1], [0, 0, 1, 1], [], []>} : vector<8x32xf32>, vector<32x128xf32>, vector<8x128xf32> -> vector<8x128xf32>
    %226 = arith.addf %224, %225 : vector<8x128xf32>
    %cst_54 = arith.constant 2.000000e+00 : f32
    %227 = vector.broadcast %cst_54 : f32 to vector<8x128xf32>
    %228 = arith.mulf %227, %226 : vector<8x128xf32>
    %229 = vector.shape_cast %14 : vector<1x128xi1> to vector<1x128xi1>
    %230 = vector.broadcast %229 : vector<1x128xi1> to vector<8x128xi1>
    %231 = arith.select %230, %228, %226 : vector<8x128xi1>, vector<8x128xf32>
    %232 = arith.negf %231 : vector<8x128xf32>
    %233 = math.exp %232 : vector<8x128xf32>
    %cst_55 = arith.constant 1.000000e+00 : f32
    %234 = vector.broadcast %cst_55 : f32 to vector<8x128xf32>
    %235 = arith.addf %234, %233 : vector<8x128xf32>
    %236 = arith.divf %234, %235 : vector<8x128xf32>
    %cst_56 = arith.constant 2.000000e+00 : f32
    %237 = vector.broadcast %cst_56 : f32 to vector<8x128xf32>
    %238 = arith.mulf %237, %236 : vector<8x128xf32>
    %cst_57 = arith.constant 1.000000e+00 : f32
    %239 = vector.broadcast %cst_57 : f32 to vector<8x128xf32>
    %240 = arith.subf %238, %239 : vector<8x128xf32>
    %241 = vector.shape_cast %14 : vector<1x128xi1> to vector<1x128xi1>
    %242 = vector.broadcast %241 : vector<1x128xi1> to vector<8x128xi1>
    %243 = arith.select %242, %240, %236 : vector<8x128xi1>, vector<8x128xf32>
    %244 = vector.extract_strided_slice %243 {offsets = [0, 0], sizes = [8, 32], strides = [1, 1]} : vector<8x128xf32> to vector<8x32xf32>
    %245 = vector.extract_strided_slice %243 {offsets = [0, 32], sizes = [8, 32], strides = [1, 1]} : vector<8x128xf32> to vector<8x32xf32>
    %246 = vector.extract_strided_slice %243 {offsets = [0, 64], sizes = [8, 32], strides = [1, 1]} : vector<8x128xf32> to vector<8x32xf32>
    %247 = vector.extract_strided_slice %243 {offsets = [0, 96], sizes = [8, 32], strides = [1, 1]} : vector<8x128xf32> to vector<8x32xf32>
    %248 = arith.mulf %245, %221 : vector<8x32xf32>
    %249 = arith.mulf %244, %246 : vector<8x32xf32>
    %250 = arith.addf %248, %249 : vector<8x32xf32>
    %251 = math.tanh %250 : vector<8x32xf32>
    %252 = arith.mulf %247, %251 : vector<8x32xf32>
    %cst_58 = arith.constant dense<0.000000e+00> : vector<8x128xf32>
    %253 = tpu.matmul %252, %2, %cst_58 {dimension_numbers = #tpu.dot_dimension_numbers<[1], [0], [0], [1], [0, 0, 1, 1], [], []>} : vector<8x32xf32>, vector<32x128xf32>, vector<8x128xf32> -> vector<8x128xf32>
    %254 = arith.addf %253, %6 : vector<8x128xf32>
    %cst_59 = arith.constant 2.000000e+00 : f32
    %255 = vector.broadcast %cst_59 : f32 to vector<8x128xf32>
    %256 = arith.mulf %255, %254 : vector<8x128xf32>
    %257 = vector.shape_cast %14 : vector<1x128xi1> to vector<1x128xi1>
    %258 = vector.broadcast %257 : vector<1x128xi1> to vector<8x128xi1>
    %259 = arith.select %258, %256, %254 : vector<8x128xi1>, vector<8x128xf32>
    %260 = arith.negf %259 : vector<8x128xf32>
    %261 = math.exp %260 : vector<8x128xf32>
    %cst_60 = arith.constant 1.000000e+00 : f32
    %262 = vector.broadcast %cst_60 : f32 to vector<8x128xf32>
    %263 = arith.addf %262, %261 : vector<8x128xf32>
    %264 = arith.divf %262, %263 : vector<8x128xf32>
    %cst_61 = arith.constant 2.000000e+00 : f32
    %265 = vector.broadcast %cst_61 : f32 to vector<8x128xf32>
    %266 = arith.mulf %265, %264 : vector<8x128xf32>
    %cst_62 = arith.constant 1.000000e+00 : f32
    %267 = vector.broadcast %cst_62 : f32 to vector<8x128xf32>
    %268 = arith.subf %266, %267 : vector<8x128xf32>
    %269 = vector.shape_cast %14 : vector<1x128xi1> to vector<1x128xi1>
    %270 = vector.broadcast %269 : vector<1x128xi1> to vector<8x128xi1>
    %271 = arith.select %270, %268, %264 : vector<8x128xi1>, vector<8x128xf32>
    %272 = vector.extract_strided_slice %271 {offsets = [0, 0], sizes = [8, 32], strides = [1, 1]} : vector<8x128xf32> to vector<8x32xf32>
    %273 = vector.extract_strided_slice %271 {offsets = [0, 32], sizes = [8, 32], strides = [1, 1]} : vector<8x128xf32> to vector<8x32xf32>
    %274 = vector.extract_strided_slice %271 {offsets = [0, 64], sizes = [8, 32], strides = [1, 1]} : vector<8x128xf32> to vector<8x32xf32>
    %275 = vector.extract_strided_slice %271 {offsets = [0, 96], sizes = [8, 32], strides = [1, 1]} : vector<8x128xf32> to vector<8x32xf32>
    %276 = arith.mulf %273, %20 : vector<8x32xf32>
    %277 = arith.mulf %272, %274 : vector<8x32xf32>
    %278 = arith.addf %276, %277 : vector<8x32xf32>
    %279 = math.tanh %278 : vector<8x32xf32>
    %280 = arith.mulf %275, %279 : vector<8x32xf32>
    %cst_63 = arith.constant dense<0.000000e+00> : vector<8x128xf32>
    %281 = tpu.matmul %280, %3, %cst_63 {dimension_numbers = #tpu.dot_dimension_numbers<[1], [0], [0], [1], [0, 0, 1, 1], [], []>} : vector<8x32xf32>, vector<32x128xf32>, vector<8x128xf32> -> vector<8x128xf32>
    %282 = arith.addf %281, %6 : vector<8x128xf32>
    %cst_64 = arith.constant 2.000000e+00 : f32
    %283 = vector.broadcast %cst_64 : f32 to vector<8x128xf32>
    %284 = arith.mulf %283, %282 : vector<8x128xf32>
    %285 = vector.shape_cast %14 : vector<1x128xi1> to vector<1x128xi1>
    %286 = vector.broadcast %285 : vector<1x128xi1> to vector<8x128xi1>
    %287 = arith.select %286, %284, %282 : vector<8x128xi1>, vector<8x128xf32>
    %288 = arith.negf %287 : vector<8x128xf32>
    %289 = math.exp %288 : vector<8x128xf32>
    %cst_65 = arith.constant 1.000000e+00 : f32
    %290 = vector.broadcast %cst_65 : f32 to vector<8x128xf32>
    %291 = arith.addf %290, %289 : vector<8x128xf32>
    %292 = arith.divf %290, %291 : vector<8x128xf32>
    %cst_66 = arith.constant 2.000000e+00 : f32
    %293 = vector.broadcast %cst_66 : f32 to vector<8x128xf32>
    %294 = arith.mulf %293, %292 : vector<8x128xf32>
    %cst_67 = arith.constant 1.000000e+00 : f32
    %295 = vector.broadcast %cst_67 : f32 to vector<8x128xf32>
    %296 = arith.subf %294, %295 : vector<8x128xf32>
    %297 = vector.shape_cast %14 : vector<1x128xi1> to vector<1x128xi1>
    %298 = vector.broadcast %297 : vector<1x128xi1> to vector<8x128xi1>
    %299 = arith.select %298, %296, %292 : vector<8x128xi1>, vector<8x128xf32>
    %300 = vector.extract_strided_slice %299 {offsets = [0, 0], sizes = [8, 32], strides = [1, 1]} : vector<8x128xf32> to vector<8x32xf32>
    %301 = vector.extract_strided_slice %299 {offsets = [0, 32], sizes = [8, 32], strides = [1, 1]} : vector<8x128xf32> to vector<8x32xf32>
    %302 = vector.extract_strided_slice %299 {offsets = [0, 64], sizes = [8, 32], strides = [1, 1]} : vector<8x128xf32> to vector<8x32xf32>
    %303 = vector.extract_strided_slice %299 {offsets = [0, 96], sizes = [8, 32], strides = [1, 1]} : vector<8x128xf32> to vector<8x32xf32>
    %304 = arith.mulf %301, %278 : vector<8x32xf32>
    %305 = arith.mulf %300, %302 : vector<8x32xf32>
    %306 = arith.addf %304, %305 : vector<8x32xf32>
    %307 = math.tanh %306 : vector<8x32xf32>
    %308 = arith.mulf %303, %307 : vector<8x32xf32>
    %cst_68 = arith.constant dense<0.000000e+00> : vector<8x128xf32>
    %309 = tpu.matmul %308, %3, %cst_68 {dimension_numbers = #tpu.dot_dimension_numbers<[1], [0], [0], [1], [0, 0, 1, 1], [], []>} : vector<8x32xf32>, vector<32x128xf32>, vector<8x128xf32> -> vector<8x128xf32>
    %310 = arith.addf %309, %6 : vector<8x128xf32>
    %cst_69 = arith.constant 2.000000e+00 : f32
    %311 = vector.broadcast %cst_69 : f32 to vector<8x128xf32>
    %312 = arith.mulf %311, %310 : vector<8x128xf32>
    %313 = vector.shape_cast %14 : vector<1x128xi1> to vector<1x128xi1>
    %314 = vector.broadcast %313 : vector<1x128xi1> to vector<8x128xi1>
    %315 = arith.select %314, %312, %310 : vector<8x128xi1>, vector<8x128xf32>
    %316 = arith.negf %315 : vector<8x128xf32>
    %317 = math.exp %316 : vector<8x128xf32>
    %cst_70 = arith.constant 1.000000e+00 : f32
    %318 = vector.broadcast %cst_70 : f32 to vector<8x128xf32>
    %319 = arith.addf %318, %317 : vector<8x128xf32>
    %320 = arith.divf %318, %319 : vector<8x128xf32>
    %cst_71 = arith.constant 2.000000e+00 : f32
    %321 = vector.broadcast %cst_71 : f32 to vector<8x128xf32>
    %322 = arith.mulf %321, %320 : vector<8x128xf32>
    %cst_72 = arith.constant 1.000000e+00 : f32
    %323 = vector.broadcast %cst_72 : f32 to vector<8x128xf32>
    %324 = arith.subf %322, %323 : vector<8x128xf32>
    %325 = vector.shape_cast %14 : vector<1x128xi1> to vector<1x128xi1>
    %326 = vector.broadcast %325 : vector<1x128xi1> to vector<8x128xi1>
    %327 = arith.select %326, %324, %320 : vector<8x128xi1>, vector<8x128xf32>
    %328 = vector.extract_strided_slice %327 {offsets = [0, 0], sizes = [8, 32], strides = [1, 1]} : vector<8x128xf32> to vector<8x32xf32>
    %329 = vector.extract_strided_slice %327 {offsets = [0, 32], sizes = [8, 32], strides = [1, 1]} : vector<8x128xf32> to vector<8x32xf32>
    %330 = vector.extract_strided_slice %327 {offsets = [0, 64], sizes = [8, 32], strides = [1, 1]} : vector<8x128xf32> to vector<8x32xf32>
    %331 = vector.extract_strided_slice %327 {offsets = [0, 96], sizes = [8, 32], strides = [1, 1]} : vector<8x128xf32> to vector<8x32xf32>
    %332 = arith.mulf %329, %306 : vector<8x32xf32>
    %333 = arith.mulf %328, %330 : vector<8x32xf32>
    %334 = arith.addf %332, %333 : vector<8x32xf32>
    %335 = math.tanh %334 : vector<8x32xf32>
    %336 = arith.mulf %331, %335 : vector<8x32xf32>
    %cst_73 = arith.constant dense<0.000000e+00> : vector<8x128xf32>
    %337 = tpu.matmul %336, %3, %cst_73 {dimension_numbers = #tpu.dot_dimension_numbers<[1], [0], [0], [1], [0, 0, 1, 1], [], []>} : vector<8x32xf32>, vector<32x128xf32>, vector<8x128xf32> -> vector<8x128xf32>
    %338 = arith.addf %337, %6 : vector<8x128xf32>
    %cst_74 = arith.constant 2.000000e+00 : f32
    %339 = vector.broadcast %cst_74 : f32 to vector<8x128xf32>
    %340 = arith.mulf %339, %338 : vector<8x128xf32>
    %341 = vector.shape_cast %14 : vector<1x128xi1> to vector<1x128xi1>
    %342 = vector.broadcast %341 : vector<1x128xi1> to vector<8x128xi1>
    %343 = arith.select %342, %340, %338 : vector<8x128xi1>, vector<8x128xf32>
    %344 = arith.negf %343 : vector<8x128xf32>
    %345 = math.exp %344 : vector<8x128xf32>
    %cst_75 = arith.constant 1.000000e+00 : f32
    %346 = vector.broadcast %cst_75 : f32 to vector<8x128xf32>
    %347 = arith.addf %346, %345 : vector<8x128xf32>
    %348 = arith.divf %346, %347 : vector<8x128xf32>
    %cst_76 = arith.constant 2.000000e+00 : f32
    %349 = vector.broadcast %cst_76 : f32 to vector<8x128xf32>
    %350 = arith.mulf %349, %348 : vector<8x128xf32>
    %cst_77 = arith.constant 1.000000e+00 : f32
    %351 = vector.broadcast %cst_77 : f32 to vector<8x128xf32>
    %352 = arith.subf %350, %351 : vector<8x128xf32>
    %353 = vector.shape_cast %14 : vector<1x128xi1> to vector<1x128xi1>
    %354 = vector.broadcast %353 : vector<1x128xi1> to vector<8x128xi1>
    %355 = arith.select %354, %352, %348 : vector<8x128xi1>, vector<8x128xf32>
    %356 = vector.extract_strided_slice %355 {offsets = [0, 0], sizes = [8, 32], strides = [1, 1]} : vector<8x128xf32> to vector<8x32xf32>
    %357 = vector.extract_strided_slice %355 {offsets = [0, 32], sizes = [8, 32], strides = [1, 1]} : vector<8x128xf32> to vector<8x32xf32>
    %358 = vector.extract_strided_slice %355 {offsets = [0, 64], sizes = [8, 32], strides = [1, 1]} : vector<8x128xf32> to vector<8x32xf32>
    %359 = vector.extract_strided_slice %355 {offsets = [0, 96], sizes = [8, 32], strides = [1, 1]} : vector<8x128xf32> to vector<8x32xf32>
    %360 = arith.mulf %357, %334 : vector<8x32xf32>
    %361 = arith.mulf %356, %358 : vector<8x32xf32>
    %362 = arith.addf %360, %361 : vector<8x32xf32>
    %363 = math.tanh %362 : vector<8x32xf32>
    %364 = arith.mulf %359, %363 : vector<8x32xf32>
    %cst_78 = arith.constant dense<0.000000e+00> : vector<8x128xf32>
    %365 = tpu.matmul %364, %3, %cst_78 {dimension_numbers = #tpu.dot_dimension_numbers<[1], [0], [0], [1], [0, 0, 1, 1], [], []>} : vector<8x32xf32>, vector<32x128xf32>, vector<8x128xf32> -> vector<8x128xf32>
    %366 = arith.addf %365, %6 : vector<8x128xf32>
    %cst_79 = arith.constant 2.000000e+00 : f32
    %367 = vector.broadcast %cst_79 : f32 to vector<8x128xf32>
    %368 = arith.mulf %367, %366 : vector<8x128xf32>
    %369 = vector.shape_cast %14 : vector<1x128xi1> to vector<1x128xi1>
    %370 = vector.broadcast %369 : vector<1x128xi1> to vector<8x128xi1>
    %371 = arith.select %370, %368, %366 : vector<8x128xi1>, vector<8x128xf32>
    %372 = arith.negf %371 : vector<8x128xf32>
    %373 = math.exp %372 : vector<8x128xf32>
    %cst_80 = arith.constant 1.000000e+00 : f32
    %374 = vector.broadcast %cst_80 : f32 to vector<8x128xf32>
    %375 = arith.addf %374, %373 : vector<8x128xf32>
    %376 = arith.divf %374, %375 : vector<8x128xf32>
    %cst_81 = arith.constant 2.000000e+00 : f32
    %377 = vector.broadcast %cst_81 : f32 to vector<8x128xf32>
    %378 = arith.mulf %377, %376 : vector<8x128xf32>
    %cst_82 = arith.constant 1.000000e+00 : f32
    %379 = vector.broadcast %cst_82 : f32 to vector<8x128xf32>
    %380 = arith.subf %378, %379 : vector<8x128xf32>
    %381 = vector.shape_cast %14 : vector<1x128xi1> to vector<1x128xi1>
    %382 = vector.broadcast %381 : vector<1x128xi1> to vector<8x128xi1>
    %383 = arith.select %382, %380, %376 : vector<8x128xi1>, vector<8x128xf32>
    %384 = vector.extract_strided_slice %383 {offsets = [0, 0], sizes = [8, 32], strides = [1, 1]} : vector<8x128xf32> to vector<8x32xf32>
    %385 = vector.extract_strided_slice %383 {offsets = [0, 32], sizes = [8, 32], strides = [1, 1]} : vector<8x128xf32> to vector<8x32xf32>
    %386 = vector.extract_strided_slice %383 {offsets = [0, 64], sizes = [8, 32], strides = [1, 1]} : vector<8x128xf32> to vector<8x32xf32>
    %387 = vector.extract_strided_slice %383 {offsets = [0, 96], sizes = [8, 32], strides = [1, 1]} : vector<8x128xf32> to vector<8x32xf32>
    %388 = arith.mulf %385, %362 : vector<8x32xf32>
    %389 = arith.mulf %384, %386 : vector<8x32xf32>
    %390 = arith.addf %388, %389 : vector<8x32xf32>
    %391 = math.tanh %390 : vector<8x32xf32>
    %392 = arith.mulf %387, %391 : vector<8x32xf32>
    %cst_83 = arith.constant dense<0.000000e+00> : vector<8x128xf32>
    %393 = tpu.matmul %392, %3, %cst_83 {dimension_numbers = #tpu.dot_dimension_numbers<[1], [0], [0], [1], [0, 0, 1, 1], [], []>} : vector<8x32xf32>, vector<32x128xf32>, vector<8x128xf32> -> vector<8x128xf32>
    %394 = arith.addf %393, %6 : vector<8x128xf32>
    %cst_84 = arith.constant 2.000000e+00 : f32
    %395 = vector.broadcast %cst_84 : f32 to vector<8x128xf32>
    %396 = arith.mulf %395, %394 : vector<8x128xf32>
    %397 = vector.shape_cast %14 : vector<1x128xi1> to vector<1x128xi1>
    %398 = vector.broadcast %397 : vector<1x128xi1> to vector<8x128xi1>
    %399 = arith.select %398, %396, %394 : vector<8x128xi1>, vector<8x128xf32>
    %400 = arith.negf %399 : vector<8x128xf32>
    %401 = math.exp %400 : vector<8x128xf32>
    %cst_85 = arith.constant 1.000000e+00 : f32
    %402 = vector.broadcast %cst_85 : f32 to vector<8x128xf32>
    %403 = arith.addf %402, %401 : vector<8x128xf32>
    %404 = arith.divf %402, %403 : vector<8x128xf32>
    %cst_86 = arith.constant 2.000000e+00 : f32
    %405 = vector.broadcast %cst_86 : f32 to vector<8x128xf32>
    %406 = arith.mulf %405, %404 : vector<8x128xf32>
    %cst_87 = arith.constant 1.000000e+00 : f32
    %407 = vector.broadcast %cst_87 : f32 to vector<8x128xf32>
    %408 = arith.subf %406, %407 : vector<8x128xf32>
    %409 = vector.shape_cast %14 : vector<1x128xi1> to vector<1x128xi1>
    %410 = vector.broadcast %409 : vector<1x128xi1> to vector<8x128xi1>
    %411 = arith.select %410, %408, %404 : vector<8x128xi1>, vector<8x128xf32>
    %412 = vector.extract_strided_slice %411 {offsets = [0, 0], sizes = [8, 32], strides = [1, 1]} : vector<8x128xf32> to vector<8x32xf32>
    %413 = vector.extract_strided_slice %411 {offsets = [0, 32], sizes = [8, 32], strides = [1, 1]} : vector<8x128xf32> to vector<8x32xf32>
    %414 = vector.extract_strided_slice %411 {offsets = [0, 64], sizes = [8, 32], strides = [1, 1]} : vector<8x128xf32> to vector<8x32xf32>
    %415 = vector.extract_strided_slice %411 {offsets = [0, 96], sizes = [8, 32], strides = [1, 1]} : vector<8x128xf32> to vector<8x32xf32>
    %416 = arith.mulf %413, %390 : vector<8x32xf32>
    %417 = arith.mulf %412, %414 : vector<8x32xf32>
    %418 = arith.addf %416, %417 : vector<8x32xf32>
    %419 = math.tanh %418 : vector<8x32xf32>
    %420 = arith.mulf %415, %419 : vector<8x32xf32>
    %cst_88 = arith.constant dense<0.000000e+00> : vector<8x128xf32>
    %421 = tpu.matmul %420, %3, %cst_88 {dimension_numbers = #tpu.dot_dimension_numbers<[1], [0], [0], [1], [0, 0, 1, 1], [], []>} : vector<8x32xf32>, vector<32x128xf32>, vector<8x128xf32> -> vector<8x128xf32>
    %422 = arith.addf %421, %6 : vector<8x128xf32>
    %cst_89 = arith.constant 2.000000e+00 : f32
    %423 = vector.broadcast %cst_89 : f32 to vector<8x128xf32>
    %424 = arith.mulf %423, %422 : vector<8x128xf32>
    %425 = vector.shape_cast %14 : vector<1x128xi1> to vector<1x128xi1>
    %426 = vector.broadcast %425 : vector<1x128xi1> to vector<8x128xi1>
    %427 = arith.select %426, %424, %422 : vector<8x128xi1>, vector<8x128xf32>
    %428 = arith.negf %427 : vector<8x128xf32>
    %429 = math.exp %428 : vector<8x128xf32>
    %cst_90 = arith.constant 1.000000e+00 : f32
    %430 = vector.broadcast %cst_90 : f32 to vector<8x128xf32>
    %431 = arith.addf %430, %429 : vector<8x128xf32>
    %432 = arith.divf %430, %431 : vector<8x128xf32>
    %cst_91 = arith.constant 2.000000e+00 : f32
    %433 = vector.broadcast %cst_91 : f32 to vector<8x128xf32>
    %434 = arith.mulf %433, %432 : vector<8x128xf32>
    %cst_92 = arith.constant 1.000000e+00 : f32
    %435 = vector.broadcast %cst_92 : f32 to vector<8x128xf32>
    %436 = arith.subf %434, %435 : vector<8x128xf32>
    %437 = vector.shape_cast %14 : vector<1x128xi1> to vector<1x128xi1>
    %438 = vector.broadcast %437 : vector<1x128xi1> to vector<8x128xi1>
    %439 = arith.select %438, %436, %432 : vector<8x128xi1>, vector<8x128xf32>
    %440 = vector.extract_strided_slice %439 {offsets = [0, 0], sizes = [8, 32], strides = [1, 1]} : vector<8x128xf32> to vector<8x32xf32>
    %441 = vector.extract_strided_slice %439 {offsets = [0, 32], sizes = [8, 32], strides = [1, 1]} : vector<8x128xf32> to vector<8x32xf32>
    %442 = vector.extract_strided_slice %439 {offsets = [0, 64], sizes = [8, 32], strides = [1, 1]} : vector<8x128xf32> to vector<8x32xf32>
    %443 = vector.extract_strided_slice %439 {offsets = [0, 96], sizes = [8, 32], strides = [1, 1]} : vector<8x128xf32> to vector<8x32xf32>
    %444 = arith.mulf %441, %418 : vector<8x32xf32>
    %445 = arith.mulf %440, %442 : vector<8x32xf32>
    %446 = arith.addf %444, %445 : vector<8x32xf32>
    %447 = math.tanh %446 : vector<8x32xf32>
    %448 = arith.mulf %443, %447 : vector<8x32xf32>
    %cst_93 = arith.constant dense<0.000000e+00> : vector<8x128xf32>
    %449 = tpu.matmul %448, %3, %cst_93 {dimension_numbers = #tpu.dot_dimension_numbers<[1], [0], [0], [1], [0, 0, 1, 1], [], []>} : vector<8x32xf32>, vector<32x128xf32>, vector<8x128xf32> -> vector<8x128xf32>
    %450 = arith.addf %449, %6 : vector<8x128xf32>
    %cst_94 = arith.constant 2.000000e+00 : f32
    %451 = vector.broadcast %cst_94 : f32 to vector<8x128xf32>
    %452 = arith.mulf %451, %450 : vector<8x128xf32>
    %453 = vector.shape_cast %14 : vector<1x128xi1> to vector<1x128xi1>
    %454 = vector.broadcast %453 : vector<1x128xi1> to vector<8x128xi1>
    %455 = arith.select %454, %452, %450 : vector<8x128xi1>, vector<8x128xf32>
    %456 = arith.negf %455 : vector<8x128xf32>
    %457 = math.exp %456 : vector<8x128xf32>
    %cst_95 = arith.constant 1.000000e+00 : f32
    %458 = vector.broadcast %cst_95 : f32 to vector<8x128xf32>
    %459 = arith.addf %458, %457 : vector<8x128xf32>
    %460 = arith.divf %458, %459 : vector<8x128xf32>
    %cst_96 = arith.constant 2.000000e+00 : f32
    %461 = vector.broadcast %cst_96 : f32 to vector<8x128xf32>
    %462 = arith.mulf %461, %460 : vector<8x128xf32>
    %cst_97 = arith.constant 1.000000e+00 : f32
    %463 = vector.broadcast %cst_97 : f32 to vector<8x128xf32>
    %464 = arith.subf %462, %463 : vector<8x128xf32>
    %465 = vector.shape_cast %14 : vector<1x128xi1> to vector<1x128xi1>
    %466 = vector.broadcast %465 : vector<1x128xi1> to vector<8x128xi1>
    %467 = arith.select %466, %464, %460 : vector<8x128xi1>, vector<8x128xf32>
    %468 = vector.extract_strided_slice %467 {offsets = [0, 0], sizes = [8, 32], strides = [1, 1]} : vector<8x128xf32> to vector<8x32xf32>
    %469 = vector.extract_strided_slice %467 {offsets = [0, 32], sizes = [8, 32], strides = [1, 1]} : vector<8x128xf32> to vector<8x32xf32>
    %470 = vector.extract_strided_slice %467 {offsets = [0, 64], sizes = [8, 32], strides = [1, 1]} : vector<8x128xf32> to vector<8x32xf32>
    %471 = vector.extract_strided_slice %467 {offsets = [0, 96], sizes = [8, 32], strides = [1, 1]} : vector<8x128xf32> to vector<8x32xf32>
    %472 = arith.mulf %469, %446 : vector<8x32xf32>
    %473 = arith.mulf %468, %470 : vector<8x32xf32>
    %474 = arith.addf %472, %473 : vector<8x32xf32>
    %475 = math.tanh %474 : vector<8x32xf32>
    %476 = arith.mulf %471, %475 : vector<8x32xf32>
    %477 = tpu.concatenate %476, %448, %420, %392, %364, %336, %308, %280 in 0 : vector<8x32xf32>, vector<8x32xf32>, vector<8x32xf32>, vector<8x32xf32>, vector<8x32xf32>, vector<8x32xf32>, vector<8x32xf32>, vector<8x32xf32> -> vector<64x32xf32>
    %cst_98 = arith.constant dense<0.000000e+00> : vector<64x4xf32>
    %478 = tpu.matmul %477, %7, %cst_98 {dimension_numbers = #tpu.dot_dimension_numbers<[1], [0], [0], [1], [0, 0, 1, 1], [], []>} : vector<64x32xf32>, vector<32x4xf32>, vector<64x4xf32> -> vector<64x4xf32>
    %479 = vector.broadcast %8 : vector<1x4xf32> to vector<64x4xf32>
    %480 = arith.addf %478, %479 : vector<64x4xf32>
    %c0_99 = arith.constant 0 : index
    %c0_100 = arith.constant 0 : index
    %481 = vector.load %arg9[%c0_99, %c0_100] : memref<64x4xf32, #tpu.memory_space<vmem>>, vector<64x4xf32>
    tpu.vector_store %arg9[%c0_99, %c0_100], %480 {strides = array<i32>} : memref<64x4xf32, #tpu.memory_space<vmem>>, vector<64x4xf32>,
    %c0_101 = arith.constant 0 : index
    %c0_102 = arith.constant 0 : index
    %482 = vector.load %arg10[%c0_101, %c0_102] : memref<8x32xf32, #tpu.memory_space<vmem>>, vector<8x32xf32>
    tpu.vector_store %arg10[%c0_101, %c0_102], %476 {strides = array<i32>} : memref<8x32xf32, #tpu.memory_space<vmem>>, vector<8x32xf32>,
    return
  }
}

</mosaic_0001>

<bundles_post_ra>
// kernel: tpu_custom_call.1
= control target key start
LH: loop header
LB: loop body
LE: loop exit
PB: predicated region body
PF: predicated region fallthrough
CT: control target
= control target key end

     0   :  { %vm105_vm0 = vcmask 1043456   ;;  %vm80_vm1 = vcmask 31744   ;;  %v2625_v8 = vmov 0.0|0.0   ;;  %s3141_s0 = inlined_call_operand.vmem [shape: f32[64,4], index: 0, kind: input, shape index: {}]   ;;  %s3142_s1 = inlined_call_operand.vmem [shape: f32[4,128], index: 1, kind: input, shape index: {}]   ;;  %s3143_s2 = inlined_call_operand.vmem [shape: f32[32,128], index: 2, kind: input, shape index: {}]   ;;  %s3144_s3 = inlined_call_operand.vmem [shape: f32[1,128], index: 3, kind: input, shape index: {}]   ;;  %s3145_s4 = inlined_call_operand.vmem [shape: f32[32,128], index: 4, kind: input, shape index: {}]   ;;  %s3146_s5 = inlined_call_operand.vmem [shape: f32[32,128], index: 5, kind: input, shape index: {}]   ;;  %s3147_s6 = inlined_call_operand.vmem [shape: f32[1,128], index: 6, kind: input, shape index: {}]   ;;  %s3148_s7 = inlined_call_operand.vmem [shape: f32[32,4], index: 7, kind: input, shape index: {}]   ;;  %s3149_s8 = inlined_call_operand.vmem [shape: f32[1,4], index: 8, kind: input, shape index: {}]   ;;  %s3150_s9 = inlined_call_operand.vmem [shape: f32[64,4], index: 9, kind: output, shape index: {0}]   ;;  %s3151_s10 = inlined_call_operand.hbm [shape: f32[8,32], index: 10, kind: output, shape index: {1}]  }
   0x1   :  { %v35_v0 = vld [vmem:[%s3142_s1] sm:$0xf]  ;;  %v70_v2 = vld [vmem:[%s3141_s0 + $0x28] sm:$0xff]  ;;  %v71_v5 = vld [vmem:[%s3141_s0 + $0x30] sm:$0xff] }
   0x2   :  { %v69_v1 = vld [vmem:[%s3141_s0 + $0x20] sm:$0xff]  ;;  %2497 = vmatprep.subr.msk.mxu1 %vm105_vm0, %v35_v0  ;;  %v37_v4 = vld [vmem:[%s3143_s2 + $0x8] sm:$0xff]  ;;  %2183 = vmatprep.subr.msk.mxu0 %vm105_vm0, %v35_v0  ;;  %v38_v10 = vld [vmem:[%s3143_s2 + $0x10] sm:$0xff] }
   0x3   :  { %2191 = vmatprep.mubr.msk.f32.mxu1 %vm80_vm1, %v69_v1  ;;  %v36_v3 = vld [vmem:[%s3143_s2] sm:$0xff]  ;;  %2498 = vmatpush3.msk.msra.mxu1 %vm105_vm0, %v35_v0  ;;  %v66_v9 = vld [vmem:[%s3141_s0 + $0x8] sm:$0xff]  ;;  %v39_v11 = vld [vmem:[%s3143_s2 + $0x18] sm:$0xff] }
   0x4   :  { %v2707_v6 = vpack.c.bf16 %v37_v4, %v36_v3  ;;  %v65_v7 = vld [vmem:[%s3141_s0] sm:$0xff]  ;;  %2192 = vmatmul.mubr.msk.f32.vlgmr.msra.gmra.mrb[0].mxu1 %vm80_vm1, %v70_v2  ;;  %2393 = vmatprep.subr.bf16.mxu1 %v2625_v8  ;;  %v72_v12 = vld [vmem:[%s3141_s0 + $0x38] sm:$0xff]  ;;  %v2729_v13 = vpack.c.bf16 %v39_v11, %v38_v10 }
   0x5   :  { %2194 = vmatprep.mubr.msk.f32.mxu1 %vm80_vm1, %v71_v5 }
   0x6   :  { %2395 = vmatpush3.bf16.msra.mxu1 %v2707_v6 }
   0x7   :  { %16 = vsyncpa [#allocation3], 0  ;;  %2184 = vmatpush3.msk.msra.mxu0 %vm105_vm0, %v35_v0  ;;  %2185 = vmatprep.mubr.msk.f32.mxu0 %vm80_vm1, %v65_v7  ;;  %vm2626_vm2 = vmmov 0   ;;  %v2627_v14 = vmov 0.0   ;;  %v60_v15 = vlaneseq  ;;  %v2759_v20 = vld [vmem:[%s3144_s3] ss:$0 sm:$0xff] }
   0x8   :  { %2396 = vmatprep.subr.bf16.mxu1 %v2625_v8  ;;  %2186 = vmatmul.mubr.msk.f32.vlgmr.msra.gmra.mrb[0].mxu0 %vm80_vm1, %v66_v9  ;;  %s2628_s3 = smov 64   ;;  %s2629_s15 = smov 32   ;;  %vm214_vm6 = vcmask 261120   ;;  %v67_v1 = vld [vmem:[%s3141_s0 + $0x10] sm:$0xff]  ;;  %v68_v2 = vld [vmem:[%s3141_s0 + $0x18] sm:$0xff] }
   0x9   :  { %2195 = vmatmul.mubr.msk.f32.gmra.mrb[2].mxu1 %vm80_vm1, %v72_v12  ;;  %2405 = vmatprep.subr.bf16.mxu0 %v2625_v8  ;;  %v61_v19 = vand.u32 127, %v60_v15  ;;  %v57_v28 = vld [vmem:[%s3148_s7 + $0x10] sm:$0xff] }
   0xa   :  { %2398 = vmatpush3.bf16.msra.mxu1 %v2729_v13  ;;  %2205 = vmatprep.mubr.msk.f32.mxu1 %vm2626_vm2, %v2627_v14 }
   0xb   :  { %2399 = vmatprep.subr.bf16.mxu1 %v2625_v8  ;;  %2407 = vmatpush3.bf16.msra.mxu0 %v2707_v6  ;;  %vm62_vm3 = vcmp.ge.s32.totalorder %v61_v19, 64  ;;  %vm63_vm4 = vcmp.lt.s32.totalorder %v61_v19, 96 }
   0xc   :  { %2408 = vmatprep.subr.bf16.mxu0 %v2625_v8  ;;  %vm2766_vm5 = vmand %vm62_vm3, %vm63_vm4  ;;  %2188 = vmatprep.mubr.msk.f32.mxu0 %vm80_vm1, %v67_v1 }
   0xd   :  { %2206 = vmatmul.mubr.f32.vlgmr.msra.gmra.mrb[4].mxu1 %v2627_v14  ;;  %2189 = vmatmul.mubr.msk.f32.gmra.mrb[2].mxu0 %vm80_vm1, %v68_v2 }
   0xe   :  { %2401 = vmatpush3.bf16.msra.mxu1 %v2707_v6  ;;  %2216 = vmatprep.mubr.msk.f32.mxu1 %vm2626_vm2, %v2627_v14 }
   0xf   :  { %2402 = vmatprep.subr.bf16.mxu1 %v2625_v8  ;;  %2410 = vmatpush3.bf16.msra.mxu0 %v2729_v13 }
  0x10   :  { %2417 = vmatprep.subr.bf16.mxu0 %v2625_v8  ;;  %2227 = vmatprep.mubr.msk.f32.mxu0 %vm2626_vm2, %v2627_v14 }
  0x12   :  { %2404 = vmatpush3.bf16.msra.mxu1 %v2729_v13 }
  0x13   :  { %2411 = vmatprep.subr.bf16.mxu1 %v2625_v8 }
  0xd7   :  { %v2752_v16 = vpop.f32.mrb[0].mxu1 }
  0xd8   :  { %v2754_v17 = vpop.f32.mrb[1].mxu1 }
  0xdb   :  { %v2187_v18 = vpop.f32.mrb[0].mxu0 }
  0xdc   :  { %v2761_v21 = vpop.f32.mrb[2].mxu1  ;;  %v175_v22 = vpop.f32.mrb[1].mxu0  ;;  %v181_v47 = vadd.f32 %v2187_v18, %v2759_v20 }
  0xdd   :  { %v2763_v23 = vpop.f32.mrb[3].mxu1  ;;  %v176_v24 = vadd.f32 %v2759_v20, %v175_v22 }
  0xe0   :  { %v284_v25 = vpop.f32.mrb[4].mxu1  ;;  %v2190_v7 = vpop.f32.mrb[2].mxu0 }
  0xe1   :  { %v288_v26 = vadd.f32 %v284_v25, %v176_v24  ;;  %v2207_v27 = vpop.f32.mrb[5].mxu1  ;;  %v185_v9 = vpop.f32.mrb[3].mxu0 }
  0xe2   :  { %v186_v11 = vadd.f32 %v2759_v20, %v185_v9 }
  0xe3   :  { %v289_v29 = vmul.f32 2.0, %v288_v26 }
  0xe5   :  { %v292_v30 = vsel %vm2766_vm5, %v289_v29, %v288_v26 }
  0xe6   :  { %v2026_v31 = vmul.f32 -1.442695, %v292_v30 }
  0xe8   :  { %2505 = vpow2.f32 %v2026_v31 }
  0xf2   :  { %v2506_v32 = vpop.eup %2505 }
  0xf3   :  { %v296_v33 = vadd.f32 1.0, %v2506_v32 }
  0xf5   :  { %2507 = vrcp.f32 %v296_v33 }
  0xff   :  { %v2508_v34 = vpop.eup %2507 }
 0x100   :  { %v299_v35 = vmul.f32 2.0, %v2508_v34 }
 0x102   :  { %v2027_v36 = vadd.f32 -1.0, %v299_v35 }
 0x104   :  { %v301_v37 = vsel %vm2766_vm5, %v2027_v36, %v2508_v34 }
 0x105   :  { %304 = vrot.lane.b32.xlu0 %v301_v37, %s2628_s3  ;;  %v302_v40 = vmul.f32 0.0, %v301_v37 }
 0x177   :  { %v305_v38 = vpop.permute.xlu0 %304 }
 0x178   :  { %v307_v39 = vmul.f32 %v305_v38, %v301_v37 }
 0x17a   :  { %309 = vrot.lane.b32.xlu0 %v307_v39, %s2629_s15 }
 0x1ec   :  { %v310_v41 = vpop.permute.xlu0 %309 }
 0x1ed   :  { %v312_v42 = vadd.f32 %v310_v41, %v302_v40  ;;  %v191_v41 = vadd.f32 %v2190_v7, %v2759_v20 }
 0x1ef   :  { %2509 = vtanh.f32 %v312_v42 }
 0x1f9   :  { %v2510_v43 = vpop.eup %2509 }
 0x1fa   :  { %315 = vrot.lane.b32.xlu1 %v2510_v43, %s2628_s3 }
 0x26c   :  { %v316_v44 = vpop.permute.xlu1 %315 }
 0x26d   :  { %v318_v45 = vmul.f32 %v316_v44, %v301_v37 }
 0x26f   :  { %320 = vrot.lane.b32.xlu1 %v318_v45, %s2629_s15 }
 0x2e1   :  { %v321_v46 = vpop.permute.xlu1 %320 }
 0x2e2   :  { %2217 = vmatmul.mubr.msk.f32.vlgmr.msra.gmra.mrb[6].mxu1 %vm214_vm6, %v321_v46 }
 0x2e3   :  { %2413 = vmatpush3.bf16.msra.mxu1 %v2707_v6  ;;  %2238 = vmatprep.mubr.msk.f32.mxu1 %vm2626_vm2, %v2627_v14 }
 0x2e4   :  { %2414 = vmatprep.subr.bf16.mxu1 %v2625_v8 }
 0x2e7   :  { %2416 = vmatpush3.bf16.msra.mxu1 %v2729_v13 }
 0x2e8   :  { %2423 = vmatprep.subr.bf16.mxu1 %v2625_v8 }
 0x3b5   :  { %v390_v48 = vpop.f32.mrb[6].mxu1 }
 0x3b6   :  { %v394_v49 = vadd.f32 %v390_v48, %v181_v47  ;;  %v2218_v50 = vpop.f32.mrb[7].mxu1 }
 0x3b8   :  { %v395_v51 = vmul.f32 2.0, %v394_v49 }
 0x3ba   :  { %v396_v52 = vsel %vm2766_vm5, %v395_v51, %v394_v49 }
 0x3bb   :  { %v2029_v53 = vmul.f32 -1.442695, %v396_v52 }
 0x3bd   :  { %2511 = vpow2.f32 %v2029_v53 }
 0x3c7   :  { %v2512_v54 = vpop.eup %2511 }
 0x3c8   :  { %v400_v55 = vadd.f32 1.0, %v2512_v54 }
 0x3ca   :  { %2513 = vrcp.f32 %v400_v55 }
 0x3d4   :  { %v2514_v56 = vpop.eup %2513 }
 0x3d5   :  { %v403_v57 = vmul.f32 2.0, %v2514_v56 }
 0x3d7   :  { %v2030_v58 = vadd.f32 -1.0, %v403_v57 }
 0x3d9   :  { %v405_v59 = vsel %vm2766_vm5, %v2030_v58, %v2514_v56 }
 0x3da   :  { %408 = vrot.lane.b32.xlu0 %v405_v59, %s2628_s3  ;;  %v406_v62 = vmul.f32 %v405_v59, %v312_v42 }
 0x44c   :  { %v409_v60 = vpop.permute.xlu0 %408 }
 0x44d   :  { %v411_v61 = vmul.f32 %v409_v60, %v405_v59 }
 0x44f   :  { %413 = vrot.lane.b32.xlu1 %v411_v61, %s2629_s15 }
 0x4c1   :  { %v414_v63 = vpop.permute.xlu1 %413 }
 0x4c2   :  { %v416_v0 = vadd.f32 %v414_v63, %v406_v62  ;;  %v196_v63 = vadd.f32 %v2759_v20, %v2754_v17 }
 0x4c4   :  { %2515 = vtanh.f32 %v416_v0 }
 0x4ce   :  { %v2516_v3 = vpop.eup %2515 }
 0x4cf   :  { %419 = vrot.lane.b32.xlu0 %v2516_v3, %s2628_s3 }
 0x541   :  { %v420_v4 = vpop.permute.xlu0 %419 }
 0x542   :  { %v422_v5 = vmul.f32 %v420_v4, %v405_v59 }
 0x544   :  { %424 = vrot.lane.b32.xlu1 %v422_v5, %s2629_s15 }
 0x5b6   :  { %v425_v10 = vpop.permute.xlu1 %424 }
 0x5b7   :  { %2228 = vmatmul.mubr.msk.f32.vlgmr.msra.gmra.mrb[4].mxu0 %vm214_vm6, %v425_v10 }
 0x5b8   :  { %2419 = vmatpush3.bf16.msra.mxu0 %v2707_v6  ;;  %2249 = vmatprep.mubr.msk.f32.mxu0 %vm2626_vm2, %v2627_v14 }
 0x5b9   :  { %2420 = vmatprep.subr.bf16.mxu0 %v2625_v8 }
 0x5bc   :  { %2422 = vmatpush3.bf16.msra.mxu0 %v2729_v13 }
 0x5bd   :  { %2429 = vmatprep.subr.bf16.mxu0 %v2625_v8 }
 0x68a   :  { %v494_v12 = vpop.f32.mrb[4].mxu0 }
 0x68b   :  { %v498_v15 = vadd.f32 %v494_v12, %v186_v11  ;;  %v2229_v18 = vpop.f32.mrb[5].mxu0 }
 0x68d   :  { %v499_v19 = vmul.f32 2.0, %v498_v15 }
 0x68f   :  { %v500_v22 = vsel %vm2766_vm5, %v499_v19, %v498_v15 }
 0x690   :  { %v2032_v24 = vmul.f32 -1.442695, %v500_v22 }
 0x692   :  { %2517 = vpow2.f32 %v2032_v24 }
 0x69c   :  { %v2518_v25 = vpop.eup %2517 }
 0x69d   :  { %v504_v26 = vadd.f32 1.0, %v2518_v25 }
 0x69f   :  { %2519 = vrcp.f32 %v504_v26 }
 0x6a9   :  { %v2520_v27 = vpop.eup %2519 }
 0x6aa   :  { %v507_v29 = vmul.f32 2.0, %v2520_v27 }
 0x6ac   :  { %v2033_v30 = vadd.f32 -1.0, %v507_v29 }
 0x6ae   :  { %v509_v31 = vsel %vm2766_vm5, %v2033_v30, %v2520_v27  ;;  %v201_v30 = vadd.f32 %v2752_v16, %v2759_v20 }
 0x6af   :  { %512 = vrot.lane.b32.xlu0 %v509_v31, %s2628_s3  ;;  %v510_v34 = vmul.f32 %v509_v31, %v416_v0 }
 0x721   :  { %v513_v32 = vpop.permute.xlu0 %512 }
 0x722   :  { %v515_v33 = vmul.f32 %v513_v32, %v509_v31 }
 0x724   :  { %517 = vrot.lane.b32.xlu1 %v515_v33, %s2629_s15 }
 0x796   :  { %v518_v35 = vpop.permute.xlu1 %517 }
 0x797   :  { %v520_v36 = vadd.f32 %v518_v35, %v510_v34 }
 0x799   :  { %2521 = vtanh.f32 %v520_v36 }
 0x7a3   :  { %v2522_v37 = vpop.eup %2521 }
 0x7a4   :  { %523 = vrot.lane.b32.xlu0 %v2522_v37, %s2628_s3 }
 0x816   :  { %v524_v38 = vpop.permute.xlu0 %523 }
 0x817   :  { %v526_v39 = vmul.f32 %v524_v38, %v509_v31 }
 0x819   :  { %528 = vrot.lane.b32.xlu1 %v526_v39, %s2629_s15 }
 0x88b   :  { %v529_v40 = vpop.permute.xlu1 %528 }
 0x88c   :  { %2239 = vmatmul.mubr.msk.f32.vlgmr.msra.gmra.mrb[8].mxu1 %vm214_vm6, %v529_v40 }
 0x88d   :  { %2425 = vmatpush3.bf16.msra.mxu1 %v2707_v6  ;;  %2260 = vmatprep.mubr.msk.f32.mxu1 %vm2626_vm2, %v2627_v14 }
 0x88e   :  { %2426 = vmatprep.subr.bf16.mxu1 %v2625_v8 }
 0x891   :  { %2428 = vmatpush3.bf16.msra.mxu1 %v2729_v13 }
 0x892   :  { %2435 = vmatprep.subr.bf16.mxu1 %v2625_v8 }
 0x95f   :  { %v598_v42 = vpop.f32.mrb[8].mxu1 }
 0x960   :  { %v602_v43 = vadd.f32 %v598_v42, %v191_v41  ;;  %v2240_v44 = vpop.f32.mrb[9].mxu1 }
 0x962   :  { %v603_v45 = vmul.f32 2.0, %v602_v43 }
 0x964   :  { %v604_v46 = vsel %vm2766_vm5, %v603_v45, %v602_v43 }
 0x965   :  { %v2035_v47 = vmul.f32 -1.442695, %v604_v46 }
 0x967   :  { %2523 = vpow2.f32 %v2035_v47 }
 0x971   :  { %v2524_v48 = vpop.eup %2523 }
 0x972   :  { %v608_v49 = vadd.f32 1.0, %v2524_v48 }
 0x974   :  { %2525 = vrcp.f32 %v608_v49  ;;  %v206_v49 = vadd.f32 %v2759_v20, %v2763_v23 }
 0x97e   :  { %v2526_v50 = vpop.eup %2525 }
 0x97f   :  { %v611_v51 = vmul.f32 2.0, %v2526_v50 }
 0x981   :  { %v2036_v52 = vadd.f32 -1.0, %v611_v51 }
 0x983   :  { %v613_v53 = vsel %vm2766_vm5, %v2036_v52, %v2526_v50 }
 0x984   :  { %616 = vrot.lane.b32.xlu0 %v613_v53, %s2628_s3  ;;  %v614_v56 = vmul.f32 %v613_v53, %v520_v36 }
 0x9f6   :  { %v617_v54 = vpop.permute.xlu0 %616 }
 0x9f7   :  { %v619_v55 = vmul.f32 %v617_v54, %v613_v53 }
 0x9f9   :  { %621 = vrot.lane.b32.xlu1 %v619_v55, %s2629_s15 }
 0xa6b   :  { %v622_v57 = vpop.permute.xlu1 %621 }
 0xa6c   :  { %v624_v58 = vadd.f32 %v622_v57, %v614_v56 }
 0xa6e   :  { %2527 = vtanh.f32 %v624_v58 }
 0xa78   :  { %v2528_v59 = vpop.eup %2527 }
 0xa79   :  { %627 = vrot.lane.b32.xlu0 %v2528_v59, %s2628_s3 }
 0xaeb   :  { %v628_v60 = vpop.permute.xlu0 %627 }
 0xaec   :  { %v630_v61 = vmul.f32 %v628_v60, %v613_v53 }
 0xaee   :  { %632 = vrot.lane.b32.xlu1 %v630_v61, %s2629_s15 }
 0xb60   :  { %v633_v62 = vpop.permute.xlu1 %632 }
 0xb61   :  { %2250 = vmatmul.mubr.msk.f32.vlgmr.msra.gmra.mrb[6].mxu0 %vm214_vm6, %v633_v62 }
 0xb62   :  { %2431 = vmatpush3.bf16.msra.mxu0 %v2707_v6  ;;  %2271 = vmatprep.mubr.msk.f32.mxu0 %vm2626_vm2, %v2627_v14 }
 0xb63   :  { %2432 = vmatprep.subr.bf16.mxu0 %v2625_v8 }
 0xb66   :  { %2434 = vmatpush3.bf16.msra.mxu0 %v2729_v13 }
 0xb67   :  { %2441 = vmatprep.subr.bf16.mxu0 %v2625_v8 }
 0xc34   :  { %v702_v0 = vpop.f32.mrb[6].mxu0 }
 0xc35   :  { %v706_v1 = vadd.f32 %v702_v0, %v196_v63  ;;  %v2251_v2 = vpop.f32.mrb[7].mxu0 }
 0xc37   :  { %v707_v3 = vmul.f32 2.0, %v706_v1 }
 0xc39   :  { %v708_v4 = vsel %vm2766_vm5, %v707_v3, %v706_v1 }
 0xc3a   :  { %v2038_v5 = vmul.f32 -1.442695, %v708_v4 }
 0xc3c   :  { %2529 = vpow2.f32 %v2038_v5 }
 0xc46   :  { %v2530_v7 = vpop.eup %2529 }
 0xc47   :  { %v712_v9 = vadd.f32 1.0, %v2530_v7  ;;  %v211_v7 = vadd.f32 %v2761_v21, %v2759_v20 }
 0xc49   :  { %2531 = vrcp.f32 %v712_v9 }
 0xc53   :  { %v2532_v10 = vpop.eup %2531 }
 0xc54   :  { %v715_v11 = vmul.f32 2.0, %v2532_v10 }
 0xc56   :  { %v2039_v12 = vadd.f32 -1.0, %v715_v11 }
 0xc58   :  { %v717_v15 = vsel %vm2766_vm5, %v2039_v12, %v2532_v10 }
 0xc59   :  { %720 = vrot.lane.b32.xlu0 %v717_v15, %s2628_s3  ;;  %v718_v19 = vmul.f32 %v717_v15, %v624_v58 }
 0xccb   :  { %v721_v17 = vpop.permute.xlu0 %720 }
 0xccc   :  { %v723_v18 = vmul.f32 %v721_v17, %v717_v15 }
 0xcce   :  { %725 = vrot.lane.b32.xlu1 %v723_v18, %s2629_s15 }
 0xd40   :  { %v726_v22 = vpop.permute.xlu1 %725 }
 0xd41   :  { %v728_v24 = vadd.f32 %v726_v22, %v718_v19 }
 0xd43   :  { %2533 = vtanh.f32 %v728_v24 }
 0xd4d   :  { %v2534_v25 = vpop.eup %2533 }
 0xd4e   :  { %731 = vrot.lane.b32.xlu0 %v2534_v25, %s2628_s3 }
 0xdc0   :  { %v732_v26 = vpop.permute.xlu0 %731 }
 0xdc1   :  { %v734_v27 = vmul.f32 %v732_v26, %v717_v15 }
 0xdc3   :  { %736 = vrot.lane.b32.xlu1 %v734_v27, %s2629_s15 }
 0xe35   :  { %v737_v29 = vpop.permute.xlu1 %736 }
 0xe36   :  { %2261 = vmatmul.mubr.msk.f32.vlgmr.msra.gmra.mrb[10].mxu1 %vm214_vm6, %v737_v29 }
 0xe37   :  { %2437 = vmatpush3.bf16.msra.mxu1 %v2707_v6  ;;  %2282 = vmatprep.mubr.msk.f32.mxu1 %vm2626_vm2, %v2627_v14 }
 0xe38   :  { %2438 = vmatprep.subr.bf16.mxu1 %v2625_v8 }
 0xe3b   :  { %2440 = vmatpush3.bf16.msra.mxu1 %v2729_v13 }
 0xe3c   :  { %2447 = vmatprep.subr.bf16.mxu1 %v2625_v8 }
 0xf09   :  { %v806_v31 = vpop.f32.mrb[10].mxu1 }
 0xf0a   :  { %v810_v32 = vadd.f32 %v806_v31, %v201_v30  ;;  %v2262_v33 = vpop.f32.mrb[11].mxu1  ;;  %v40_v31 = vld [vmem:[%s3145_s4] sm:$0xff] }
 0xf0b   :  { %v42_v33 = vld [vmem:[%s3145_s4 + $0x10] sm:$0xff] }
 0xf0c   :  { %v811_v34 = vmul.f32 2.0, %v810_v32 }
 0xf0e   :  { %v812_v35 = vsel %vm2766_vm5, %v811_v34, %v810_v32  ;;  %v41_v32 = vld [vmem:[%s3145_s4 + $0x8] sm:$0xff] }
 0xf0f   :  { %v2041_v6 = vmul.f32 -1.442695, %v812_v35  ;;  %v2442_v34 = vpack.c.bf16 %v41_v32, %v40_v31  ;;  %v43_v35 = vld [vmem:[%s3145_s4 + $0x18] sm:$0xff] }
 0xf11   :  { %2535 = vpow2.f32 %v2041_v6  ;;  %v2445_v6 = vpack.c.bf16 %v43_v35, %v42_v33 }
 0xf1b   :  { %v2536_v36 = vpop.eup %2535 }
 0xf1c   :  { %v816_v37 = vadd.f32 1.0, %v2536_v36 }
 0xf1e   :  { %2537 = vrcp.f32 %v816_v37 }
 0xf28   :  { %v2538_v38 = vpop.eup %2537 }
 0xf29   :  { %v819_v39 = vmul.f32 2.0, %v2538_v38 }
 0xf2b   :  { %v2042_v13 = vadd.f32 -1.0, %v819_v39 }
 0xf2d   :  { %v821_v40 = vsel %vm2766_vm5, %v2042_v13, %v2538_v38  ;;  %v2916_v13 = vld [vmem:[%s3147_s6] ss:$0 sm:$0xff] }
 0xf2e   :  { %824 = vrot.lane.b32.xlu0 %v821_v40, %s2628_s3  ;;  %v822_v42 = vmul.f32 %v821_v40, %v728_v24 }
 0xfa0   :  { %v825_v16 = vpop.permute.xlu0 %824 }
 0xfa1   :  { %v827_v41 = vmul.f32 %v825_v16, %v821_v40 }
 0xfa3   :  { %829 = vrot.lane.b32.xlu1 %v827_v41, %s2629_s15 }
0x1015   :  { %v830_v43 = vpop.permute.xlu1 %829 }
0x1016   :  { %v832_v44 = vadd.f32 %v830_v43, %v822_v42 }
0x1018   :  { %2539 = vtanh.f32 %v832_v44 }
0x1022   :  { %v2540_v45 = vpop.eup %2539 }
0x1023   :  { %835 = vrot.lane.b32.xlu0 %v2540_v45, %s2628_s3 }
0x1095   :  { %v836_v46 = vpop.permute.xlu0 %835 }
0x1096   :  { %v838_v47 = vmul.f32 %v836_v46, %v821_v40 }
0x1098   :  { %840 = vrot.lane.b32.xlu1 %v838_v47, %s2629_s15 }
0x110a   :  { %v841_v48 = vpop.permute.xlu1 %840 }
0x110b   :  { %2272 = vmatmul.mubr.msk.f32.vlgmr.msra.gmra.mrb[8].mxu0 %vm214_vm6, %v841_v48 }
0x110c   :  { %2293 = vmatprep.mubr.msk.f32.mxu0 %vm2626_vm2, %v2627_v14  ;;  %2443 = vmatpush3.bf16.msra.mxu0 %v2442_v34 }
0x110d   :  { %2444 = vmatprep.subr.bf16.mxu0 %v2625_v8 }
0x1110   :  { %2446 = vmatpush3.bf16.msra.mxu0 %v2445_v6 }
0x1111   :  { %2453 = vmatprep.subr.bf16.mxu0 %v2625_v8 }
0x11de   :  { %v910_v50 = vpop.f32.mrb[8].mxu0 }
0x11df   :  { %v914_v51 = vadd.f32 %v910_v50, %v206_v49  ;;  %v2273_v52 = vpop.f32.mrb[9].mxu0 }
0x11e1   :  { %v915_v53 = vmul.f32 2.0, %v914_v51 }
0x11e3   :  { %v916_v54 = vsel %vm2766_vm5, %v915_v53, %v914_v51 }
0x11e4   :  { %v2044_v55 = vmul.f32 -1.442695, %v916_v54 }
0x11e6   :  { %2541 = vpow2.f32 %v2044_v55 }
0x11f0   :  { %v2542_v56 = vpop.eup %2541 }
0x11f1   :  { %v920_v57 = vadd.f32 1.0, %v2542_v56  ;;  %v44_v56 = vld [vmem:[%s3146_s5] sm:$0xff] }
0x11f3   :  { %2543 = vrcp.f32 %v920_v57  ;;  %v45_v57 = vld [vmem:[%s3146_s5 + $0x8] sm:$0xff] }
0x11fd   :  { %v2544_v58 = vpop.eup %2543 }
0x11fe   :  { %v923_v59 = vmul.f32 2.0, %v2544_v58 }
0x1200   :  { %v2045_v60 = vadd.f32 -1.0, %v923_v59  ;;  %v2934_v59 = vpack.c.bf16 %v45_v57, %v44_v56 }
0x1202   :  { %v925_v61 = vsel %vm2766_vm5, %v2045_v60, %v2544_v58  ;;  %v46_v58 = vld [vmem:[%s3146_s5 + $0x10] sm:$0xff]  ;;  %v47_v60 = vld [vmem:[%s3146_s5 + $0x18] sm:$0xff] }
0x1203   :  { %928 = vrot.lane.b32.xlu0 %v925_v61, %s2628_s3  ;;  %v926_v63 = vmul.f32 %v925_v61, %v832_v44 }
0x1275   :  { %v929_v23 = vpop.permute.xlu0 %928 }
0x1276   :  { %v931_v62 = vmul.f32 %v929_v23, %v925_v61 }
0x1278   :  { %933 = vrot.lane.b32.xlu1 %v931_v62, %s2629_s15 }
0x12ea   :  { %v934_v0 = vpop.permute.xlu1 %933 }
0x12eb   :  { %v936_v1 = vadd.f32 %v934_v0, %v926_v63 }
0x12ed   :  { %2545 = vtanh.f32 %v936_v1 }
0x12f7   :  { %v2546_v2 = vpop.eup %2545 }
0x12f8   :  { %939 = vrot.lane.b32.xlu0 %v2546_v2, %s2628_s3 }
0x136a   :  { %v940_v3 = vpop.permute.xlu0 %939 }
0x136b   :  { %v942_v4 = vmul.f32 %v940_v3, %v925_v61  ;;  %v2940_v61 = vpack.c.bf16 %v47_v60, %v46_v58 }
0x136d   :  { %944 = vrot.lane.b32.xlu1 %v942_v4, %s2629_s15 }
0x13df   :  { %v945_v5 = vpop.permute.xlu1 %944 }
0x13e0   :  { %2283 = vmatmul.mubr.msk.f32.vlgmr.msra.gmra.mrb[12].mxu1 %vm214_vm6, %v945_v5 }
0x13e1   :  { %2304 = vmatprep.mubr.msk.f32.mxu1 %vm2626_vm2, %v2627_v14  ;;  %2449 = vmatpush3.bf16.msra.mxu1 %v2934_v59 }
0x13e2   :  { %2450 = vmatprep.subr.bf16.mxu1 %v2625_v8 }
0x13e5   :  { %2452 = vmatpush3.bf16.msra.mxu1 %v2940_v61 }
0x13e6   :  { %2459 = vmatprep.subr.bf16.mxu1 %v2625_v8 }
0x14b3   :  { %v1014_v9 = vpop.f32.mrb[12].mxu1 }
0x14b4   :  { %v1018_v10 = vadd.f32 %v1014_v9, %v211_v7  ;;  %v2284_v11 = vpop.f32.mrb[13].mxu1 }
0x14b6   :  { %v1019_v12 = vmul.f32 2.0, %v1018_v10 }
0x14b8   :  { %v1020_v15 = vsel %vm2766_vm5, %v1019_v12, %v1018_v10 }
0x14b9   :  { %v2047_v17 = vmul.f32 -1.442695, %v1020_v15 }
0x14bb   :  { %2547 = vpow2.f32 %v2047_v17 }
0x14c5   :  { %v2548_v18 = vpop.eup %2547 }
0x14c6   :  { %v1024_v19 = vadd.f32 1.0, %v2548_v18 }
0x14c8   :  { %2549 = vrcp.f32 %v1024_v19 }
0x14d2   :  { %v2550_v22 = vpop.eup %2549 }
0x14d3   :  { %v1027_v24 = vmul.f32 2.0, %v2550_v22 }
0x14d5   :  { %v2048_v25 = vadd.f32 -1.0, %v1027_v24 }
0x14d7   :  { %v1029_v26 = vsel %vm2766_vm5, %v2048_v25, %v2550_v22 }
0x14d8   :  { %1032 = vrot.lane.b32.xlu0 %v1029_v26, %s2628_s3  ;;  %v1030_v27 = vmul.f32 %v1029_v26, %v936_v1 }
0x154a   :  { %v1033_v20 = vpop.permute.xlu0 %1032 }
0x154b   :  { %v1035_v21 = vmul.f32 %v1033_v20, %v1029_v26 }
0x154d   :  { %1037 = vrot.lane.b32.xlu1 %v1035_v21, %s2629_s15 }
0x15bf   :  { %v1038_v29 = vpop.permute.xlu1 %1037 }
0x15c0   :  { %v1040_v30 = vadd.f32 %v1038_v29, %v1030_v27 }
0x15c2   :  { %2551 = vtanh.f32 %v1040_v30 }
0x15cc   :  { %v2552_v36 = vpop.eup %2551 }
0x15cd   :  { %1043 = vrot.lane.b32.xlu0 %v2552_v36, %s2628_s3 }
0x163f   :  { %v1044_v37 = vpop.permute.xlu0 %1043 }
0x1640   :  { %v1046_v38 = vmul.f32 %v1044_v37, %v1029_v26 }
0x1642   :  { %1048 = vrot.lane.b32.xlu1 %v1046_v38, %s2629_s15 }
0x16b4   :  { %v1049_v39 = vpop.permute.xlu1 %1048 }
0x16b5   :  { %2294 = vmatmul.mubr.msk.f32.vlgmr.msra.gmra.mrb[10].mxu0 %vm214_vm6, %v1049_v39 }
0x16b6   :  { %2315 = vmatprep.mubr.msk.f32.mxu0 %vm2626_vm2, %v2627_v14  ;;  %2455 = vmatpush3.bf16.msra.mxu0 %v2934_v59 }
0x16b7   :  { %2456 = vmatprep.subr.bf16.mxu0 %v2625_v8 }
0x16ba   :  { %2458 = vmatpush3.bf16.msra.mxu0 %v2940_v61 }
0x16bb   :  { %2465 = vmatprep.subr.bf16.mxu0 %v2625_v8 }
0x1788   :  { %v1118_v40 = vpop.f32.mrb[10].mxu0 }
0x1789   :  { %v1119_v16 = vadd.f32 %v2916_v13, %v1118_v40  ;;  %v2295_v41 = vpop.f32.mrb[11].mxu0 }
0x178b   :  { %v1122_v42 = vmul.f32 2.0, %v1119_v16 }
0x178d   :  { %v1123_v43 = vsel %vm2766_vm5, %v1122_v42, %v1119_v16 }
0x178e   :  { %v2050_v44 = vmul.f32 -1.442695, %v1123_v43 }
0x1790   :  { %2553 = vpow2.f32 %v2050_v44 }
0x179a   :  { %v2554_v45 = vpop.eup %2553 }
0x179b   :  { %v1127_v46 = vadd.f32 1.0, %v2554_v45 }
0x179d   :  { %2555 = vrcp.f32 %v1127_v46 }
0x17a7   :  { %v2556_v47 = vpop.eup %2555 }
0x17a8   :  { %v1130_v48 = vmul.f32 2.0, %v2556_v47 }
0x17aa   :  { %v2051_v49 = vadd.f32 -1.0, %v1130_v48 }
0x17ac   :  { %v1132_v50 = vsel %vm2766_vm5, %v2051_v49, %v2556_v47 }
0x17ad   :  { %1135 = vrot.lane.b32.xlu0 %v1132_v50, %s2628_s3  ;;  %v1133_v53 = vmul.f32 0.0, %v1132_v50 }
0x181f   :  { %v1136_v51 = vpop.permute.xlu0 %1135 }
0x1820   :  { %v1138_v52 = vmul.f32 %v1136_v51, %v1132_v50 }
0x1822   :  { %1140 = vrot.lane.b32.xlu1 %v1138_v52, %s2629_s15 }
0x1894   :  { %v1141_v54 = vpop.permute.xlu1 %1140 }
0x1895   :  { %v1143_v55 = vadd.f32 %v1141_v54, %v1133_v53 }
0x1897   :  { %2557 = vtanh.f32 %v1143_v55 }
0x18a1   :  { %v2558_v23 = vpop.eup %2557 }
0x18a2   :  { %1146 = vrot.lane.b32.xlu0 %v2558_v23, %s2628_s3 }
0x1914   :  { %v1147_v62 = vpop.permute.xlu0 %1146 }
0x1915   :  { %v1149_v63 = vmul.f32 %v1147_v62, %v1132_v50 }
0x1917   :  { %1151 = vrot.lane.b32.xlu1 %v1149_v63, %s2629_s15 }
0x1989   :  { %v2951_v0 = vpop.permute.xlu1 %1151 }
0x198a   :  { %2305 = vmatmul.mubr.msk.f32.vlgmr.msra.gmra.mrb[14].mxu1 %vm214_vm6, %v2951_v0 }
0x198b   :  { %2461 = vmatpush3.bf16.msra.mxu1 %v2934_v59  ;;  %2326 = vmatprep.mubr.msk.f32.mxu1 %vm2626_vm2, %v2627_v14 }
0x198c   :  { %2462 = vmatprep.subr.bf16.mxu1 %v2625_v8 }
0x198f   :  { %2464 = vmatpush3.bf16.msra.mxu1 %v2940_v61 }
0x1990   :  { %2471 = vmatprep.subr.bf16.mxu1 %v2625_v8 }
0x1a5d   :  { %v1221_v1 = vpop.f32.mrb[14].mxu1 }
0x1a5e   :  { %v1222_v2 = vadd.f32 %v2916_v13, %v1221_v1  ;;  %v2306_v3 = vpop.f32.mrb[15].mxu1 }
0x1a60   :  { %v1225_v4 = vmul.f32 2.0, %v1222_v2 }
0x1a62   :  { %v1226_v5 = vsel %vm2766_vm5, %v1225_v4, %v1222_v2 }
0x1a63   :  { %v2053_v7 = vmul.f32 -1.442695, %v1226_v5 }
0x1a65   :  { %2559 = vpow2.f32 %v2053_v7 }
0x1a6f   :  { %v2560_v9 = vpop.eup %2559 }
0x1a70   :  { %v1230_v10 = vadd.f32 1.0, %v2560_v9 }
0x1a72   :  { %2561 = vrcp.f32 %v1230_v10 }
0x1a7c   :  { %v2562_v11 = vpop.eup %2561 }
0x1a7d   :  { %v1233_v12 = vmul.f32 2.0, %v2562_v11 }
0x1a7f   :  { %v2054_v15 = vadd.f32 -1.0, %v1233_v12 }
0x1a81   :  { %v1235_v17 = vsel %vm2766_vm5, %v2054_v15, %v2562_v11 }
0x1a82   :  { %1238 = vrot.lane.b32.xlu0 %v1235_v17, %s2628_s3  ;;  %v1236_v22 = vmul.f32 %v1235_v17, %v1143_v55 }
0x1af4   :  { %v1239_v18 = vpop.permute.xlu0 %1238 }
0x1af5   :  { %v1241_v19 = vmul.f32 %v1239_v18, %v1235_v17 }
0x1af7   :  { %1243 = vrot.lane.b32.xlu1 %v1241_v19, %s2629_s15 }
0x1b69   :  { %v1244_v24 = vpop.permute.xlu1 %1243 }
0x1b6a   :  { %v1246_v25 = vadd.f32 %v1244_v24, %v1236_v22 }
0x1b6c   :  { %2563 = vtanh.f32 %v1246_v25 }
0x1b76   :  { %v2564_v26 = vpop.eup %2563 }
0x1b77   :  { %1249 = vrot.lane.b32.xlu0 %v2564_v26, %s2628_s3 }
0x1be9   :  { %v1250_v20 = vpop.permute.xlu0 %1249 }
0x1bea   :  { %v1252_v21 = vmul.f32 %v1250_v20, %v1235_v17 }
0x1bec   :  { %1254 = vrot.lane.b32.xlu1 %v1252_v21, %s2629_s15 }
0x1c5e   :  { %v2970_v27 = vpop.permute.xlu1 %1254 }
0x1c5f   :  { %2316 = vmatmul.mubr.msk.f32.vlgmr.msra.gmra.mrb[12].mxu0 %vm214_vm6, %v2970_v27 }
0x1c60   :  { %2467 = vmatpush3.bf16.msra.mxu0 %v2934_v59  ;;  %2337 = vmatprep.mubr.msk.f32.mxu0 %vm2626_vm2, %v2627_v14 }
0x1c61   :  { %2468 = vmatprep.subr.bf16.mxu0 %v2625_v8 }
0x1c64   :  { %2470 = vmatpush3.bf16.msra.mxu0 %v2940_v61 }
0x1c65   :  { %2477 = vmatprep.subr.bf16.mxu0 %v2625_v8 }
0x1d32   :  { %v1324_v29 = vpop.f32.mrb[12].mxu0 }
0x1d33   :  { %v1325_v30 = vadd.f32 %v2916_v13, %v1324_v29  ;;  %v2317_v31 = vpop.f32.mrb[13].mxu0 }
0x1d35   :  { %v1328_v32 = vmul.f32 2.0, %v1325_v30 }
0x1d37   :  { %v1329_v33 = vsel %vm2766_vm5, %v1328_v32, %v1325_v30 }
0x1d38   :  { %v2056_v34 = vmul.f32 -1.442695, %v1329_v33 }
0x1d3a   :  { %2565 = vpow2.f32 %v2056_v34 }
0x1d44   :  { %v2566_v35 = vpop.eup %2565 }
0x1d45   :  { %v1333_v6 = vadd.f32 1.0, %v2566_v35 }
0x1d47   :  { %2567 = vrcp.f32 %v1333_v6 }
0x1d51   :  { %v2568_v36 = vpop.eup %2567 }
0x1d52   :  { %v1336_v37 = vmul.f32 2.0, %v2568_v36 }
0x1d54   :  { %v2057_v38 = vadd.f32 -1.0, %v1336_v37 }
0x1d56   :  { %v1338_v39 = vsel %vm2766_vm5, %v2057_v38, %v2568_v36 }
0x1d57   :  { %1341 = vrot.lane.b32.xlu0 %v1338_v39, %s2628_s3  ;;  %v1339_v41 = vmul.f32 %v1338_v39, %v1246_v25 }
0x1dc9   :  { %v1342_v40 = vpop.permute.xlu0 %1341 }
0x1dca   :  { %v1344_v16 = vmul.f32 %v1342_v40, %v1338_v39 }
0x1dcc   :  { %1346 = vrot.lane.b32.xlu1 %v1344_v16, %s2629_s15 }
0x1e3e   :  { %v1347_v42 = vpop.permute.xlu1 %1346 }
0x1e3f   :  { %v1349_v43 = vadd.f32 %v1347_v42, %v1339_v41 }
0x1e41   :  { %2569 = vtanh.f32 %v1349_v43 }
0x1e4b   :  { %v2570_v44 = vpop.eup %2569 }
0x1e4c   :  { %1352 = vrot.lane.b32.xlu0 %v2570_v44, %s2628_s3 }
0x1ebe   :  { %v1353_v45 = vpop.permute.xlu0 %1352 }
0x1ebf   :  { %v1355_v46 = vmul.f32 %v1353_v45, %v1338_v39 }
0x1ec1   :  { %1357 = vrot.lane.b32.xlu1 %v1355_v46, %s2629_s15 }
0x1f33   :  { %v2989_v47 = vpop.permute.xlu1 %1357 }
0x1f34   :  { %2327 = vmatmul.mubr.msk.f32.vlgmr.msra.gmra.mrb[16].mxu1 %vm214_vm6, %v2989_v47 }
0x1f35   :  { %2473 = vmatpush3.bf16.msra.mxu1 %v2934_v59  ;;  %2348 = vmatprep.mubr.msk.f32.mxu1 %vm2626_vm2, %v2627_v14 }
0x1f36   :  { %2474 = vmatprep.subr.bf16.mxu1 %v2625_v8 }
0x1f39   :  { %2476 = vmatpush3.bf16.msra.mxu1 %v2940_v61 }
0x1f3a   :  { %2483 = vmatprep.subr.bf16.mxu1 %v2625_v8 }
0x2007   :  { %v1427_v48 = vpop.f32.mrb[16].mxu1 }
0x2008   :  { %v1428_v49 = vadd.f32 %v2916_v13, %v1427_v48  ;;  %v2328_v50 = vpop.f32.mrb[17].mxu1 }
0x200a   :  { %v1431_v51 = vmul.f32 2.0, %v1428_v49 }
0x200c   :  { %v1432_v52 = vsel %vm2766_vm5, %v1431_v51, %v1428_v49 }
0x200d   :  { %v2059_v53 = vmul.f32 -1.442695, %v1432_v52 }
0x200f   :  { %2571 = vpow2.f32 %v2059_v53 }
0x2019   :  { %v2572_v54 = vpop.eup %2571 }
0x201a   :  { %v1436_v55 = vadd.f32 1.0, %v2572_v54 }
0x201c   :  { %2573 = vrcp.f32 %v1436_v55 }
0x2026   :  { %v2574_v56 = vpop.eup %2573 }
0x2027   :  { %v1439_v57 = vmul.f32 2.0, %v2574_v56 }
0x2029   :  { %v2060_v58 = vadd.f32 -1.0, %v1439_v57 }
0x202b   :  { %v1441_v60 = vsel %vm2766_vm5, %v2060_v58, %v2574_v56 }
0x202c   :  { %1444 = vrot.lane.b32.xlu0 %v1441_v60, %s2628_s3  ;;  %v1442_v63 = vmul.f32 %v1441_v60, %v1349_v43 }
0x209e   :  { %v1445_v23 = vpop.permute.xlu0 %1444 }
0x209f   :  { %v1447_v62 = vmul.f32 %v1445_v23, %v1441_v60 }
0x20a1   :  { %1449 = vrot.lane.b32.xlu1 %v1447_v62, %s2629_s15 }
0x2113   :  { %v1450_v1 = vpop.permute.xlu1 %1449 }
0x2114   :  { %v1452_v2 = vadd.f32 %v1450_v1, %v1442_v63 }
0x2116   :  { %2575 = vtanh.f32 %v1452_v2 }
0x2120   :  { %v2576_v3 = vpop.eup %2575 }
0x2121   :  { %1455 = vrot.lane.b32.xlu0 %v2576_v3, %s2628_s3 }
0x2193   :  { %v1456_v4 = vpop.permute.xlu0 %1455 }
0x2194   :  { %v1458_v5 = vmul.f32 %v1456_v4, %v1441_v60 }
0x2196   :  { %1460 = vrot.lane.b32.xlu1 %v1458_v5, %s2629_s15 }
0x2208   :  { %v3008_v7 = vpop.permute.xlu1 %1460 }
0x2209   :  { %2338 = vmatmul.mubr.msk.f32.vlgmr.msra.gmra.mrb[14].mxu0 %vm214_vm6, %v3008_v7 }
0x220a   :  { %2479 = vmatpush3.bf16.msra.mxu0 %v2934_v59  ;;  %2359 = vmatprep.mubr.msk.f32.mxu0 %vm2626_vm2, %v2627_v14 }
0x220b   :  { %2480 = vmatprep.subr.bf16.mxu0 %v2625_v8 }
0x220e   :  { %2482 = vmatpush3.bf16.msra.mxu0 %v2940_v61 }
0x22dc   :  { %v1530_v9 = vpop.f32.mrb[14].mxu0 }
0x22dd   :  { %v1531_v10 = vadd.f32 %v2916_v13, %v1530_v9  ;;  %v2339_v11 = vpop.f32.mrb[15].mxu0 }
0x22df   :  { %v1534_v12 = vmul.f32 2.0, %v1531_v10 }
0x22e1   :  { %v1535_v15 = vsel %vm2766_vm5, %v1534_v12, %v1531_v10 }
0x22e2   :  { %v2062_v17 = vmul.f32 -1.442695, %v1535_v15 }
0x22e4   :  { %2577 = vpow2.f32 %v2062_v17 }
0x22ee   :  { %v2578_v18 = vpop.eup %2577 }
0x22ef   :  { %v1539_v19 = vadd.f32 1.0, %v2578_v18 }
0x22f1   :  { %2579 = vrcp.f32 %v1539_v19 }
0x22fb   :  { %v2580_v22 = vpop.eup %2579 }
0x22fc   :  { %v1542_v24 = vmul.f32 2.0, %v2580_v22 }
0x22fe   :  { %v2063_v25 = vadd.f32 -1.0, %v1542_v24 }
0x2300   :  { %v1544_v26 = vsel %vm2766_vm5, %v2063_v25, %v2580_v22 }
0x2301   :  { %1547 = vrot.lane.b32.xlu0 %v1544_v26, %s2628_s3  ;;  %v1545_v29 = vmul.f32 %v1544_v26, %v1452_v2 }
0x2373   :  { %v1548_v20 = vpop.permute.xlu0 %1547 }
0x2374   :  { %v1550_v21 = vmul.f32 %v1548_v20, %v1544_v26 }
0x2376   :  { %1552 = vrot.lane.b32.xlu1 %v1550_v21, %s2629_s15 }
0x23e8   :  { %v1553_v30 = vpop.permute.xlu1 %1552 }
0x23e9   :  { %v1555_v31 = vadd.f32 %v1553_v30, %v1545_v29 }
0x23eb   :  { %2581 = vtanh.f32 %v1555_v31 }
0x23f5   :  { %v2582_v32 = vpop.eup %2581 }
0x23f6   :  { %1558 = vrot.lane.b32.xlu0 %v2582_v32, %s2628_s3 }
0x2468   :  { %v1559_v33 = vpop.permute.xlu0 %1558 }
0x2469   :  { %v1561_v34 = vmul.f32 %v1559_v33, %v1544_v26 }
0x246b   :  { %1563 = vrot.lane.b32.xlu1 %v1561_v34, %s2629_s15 }
0x24dd   :  { %v3026_v35 = vpop.permute.xlu1 %1563 }
0x24de   :  { %2349 = vmatmul.mubr.msk.f32.vlgmr.msra.gmra.mrb[18].mxu1 %vm214_vm6, %v3026_v35 }
0x24df   :  { %2485 = vmatpush3.bf16.msra.mxu1 %v2934_v59  ;;  %2370 = vmatprep.mubr.msk.f32.mxu1 %vm2626_vm2, %v2627_v14 }
0x24e0   :  { %2486 = vmatprep.subr.bf16.mxu1 %v2625_v8 }
0x24e3   :  { %2488 = vmatpush3.bf16.msra.mxu1 %v2940_v61 }
0x25b1   :  { %v1633_v6 = vpop.f32.mrb[18].mxu1 }
0x25b2   :  { %v1634_v36 = vadd.f32 %v2916_v13, %v1633_v6  ;;  %v2350_v37 = vpop.f32.mrb[19].mxu1 }
0x25b3   :  { %v56_v37 = vld [vmem:[%s3148_s7 + $0x8] sm:$0xff] }
0x25b4   :  { %v1637_v38 = vmul.f32 2.0, %v1634_v36 }
0x25b6   :  { %v1638_v39 = vsel %vm2766_vm5, %v1637_v38, %v1634_v36  ;;  %v55_v36 = vld [vmem:[%s3148_s7] sm:$0xff] }
0x25b7   :  { %v2065_v40 = vmul.f32 -1.442695, %v1638_v39  ;;  %v2489_v38 = vpack.c.bf16 %v56_v37, %v55_v36  ;;  %v58_v39 = vld [vmem:[%s3148_s7 + $0x18] sm:$0xff]  ;;  %s2630_s7 = smov [#allocation2]  }
0x25b9   :  { %2583 = vpow2.f32 %v2065_v40  ;;  %v2493_v40 = vpack.c.bf16 %v58_v39, %v57_v28  ;;  %2490 = vmatprep.subr.bf16.mxu0 %v2489_v38 }
0x25c3   :  { %v2584_v16 = vpop.eup %2583 }
0x25c4   :  { %v1642_v41 = vadd.f32 1.0, %v2584_v16 }
0x25c6   :  { %2585 = vrcp.f32 %v1642_v41 }
0x25d0   :  { %v2586_v59 = vpop.eup %2585 }
0x25d1   :  { %v1645_v42 = vmul.f32 2.0, %v2586_v59 }
0x25d3   :  { %v2066_v14 = vadd.f32 -1.0, %v1645_v42 }
0x25d5   :  { %v1647_v8 = vsel %vm2766_vm5, %v2066_v14, %v2586_v59 }
0x25d6   :  { %1650 = vrot.lane.b32.xlu0 %v1647_v8, %s2628_s3  ;;  %v1648_v44 = vmul.f32 %v1647_v8, %v1555_v31 }
0x2648   :  { %v1651_v61 = vpop.permute.xlu0 %1650 }
0x2649   :  { %v1653_v43 = vmul.f32 %v1651_v61, %v1647_v8 }
0x264b   :  { %1655 = vrot.lane.b32.xlu1 %v1653_v43, %s2629_s15 }
0x26bd   :  { %v1656_v45 = vpop.permute.xlu1 %1655 }
0x26be   :  { %v1658_v46 = vadd.f32 %v1656_v45, %v1648_v44 }
0x26c0   :  { %2587 = vtanh.f32 %v1658_v46 }
0x26ca   :  { %v2588_v48 = vpop.eup %2587 }
0x26cb   :  { %1661 = vrot.lane.b32.xlu0 %v2588_v48, %s2628_s3 }
0x273d   :  { %v1662_v49 = vpop.permute.xlu0 %1661 }
0x273e   :  { %v1664_v50 = vmul.f32 %v1662_v49, %v1647_v8 }
0x2740   :  { %1666 = vrot.lane.b32.xlu1 %v1664_v50, %s2629_s15 }
0x27b2   :  { %v3044_v51 = vpop.permute.xlu1 %1666 }
0x27b3   :  { %2360 = vmatmul.mubr.msk.f32.vlgmr.msra.gmra.mrb[16].mxu0 %vm214_vm6, %v3044_v51 }
0x27b4   :  { %2492 = vmatpush3.bf16.msra.mxu0 %v2489_v38 }
0x27b5   :  { %2494 = vmatprep.subr.bf16.mxu0 %v2493_v40 }
0x27b8   :  { %2496 = vmatpush3.bf16.msra.mxu0 %v2493_v40 }
0x2886   :  { %v1736_v52 = vpop.f32.mrb[16].mxu0 }
0x2887   :  { %v1737_v53 = vadd.f32 %v2916_v13, %v1736_v52  ;;  %v2361_v54 = vpop.f32.mrb[17].mxu0 }
0x2889   :  { %v1740_v55 = vmul.f32 2.0, %v1737_v53 }
0x288b   :  { %v1741_v56 = vsel %vm2766_vm5, %v1740_v55, %v1737_v53 }
0x288c   :  { %v2068_v57 = vmul.f32 -1.442695, %v1741_v56 }
0x288e   :  { %2589 = vpow2.f32 %v2068_v57 }
0x2898   :  { %v2590_v58 = vpop.eup %2589 }
0x2899   :  { %v1745_v60 = vadd.f32 1.0, %v2590_v58 }
0x289b   :  { %2591 = vrcp.f32 %v1745_v60 }
0x28a5   :  { %v2592_v23 = vpop.eup %2591 }
0x28a6   :  { %v1748_v62 = vmul.f32 2.0, %v2592_v23 }
0x28a8   :  { %v2069_v63 = vadd.f32 -1.0, %v1748_v62 }
0x28aa   :  { %v1750_v1 = vsel %vm2766_vm5, %v2069_v63, %v2592_v23 }
0x28ab   :  { %1753 = vrot.lane.b32.xlu0 %v1750_v1, %s2628_s3  ;;  %v1751_v4 = vmul.f32 %v1750_v1, %v1658_v46 }
0x291d   :  { %v1754_v2 = vpop.permute.xlu0 %1753 }
0x291e   :  { %v1756_v3 = vmul.f32 %v1754_v2, %v1750_v1 }
0x2920   :  { %1758 = vrot.lane.b32.xlu1 %v1756_v3, %s2629_s15 }
0x2992   :  { %v1759_v5 = vpop.permute.xlu1 %1758 }
0x2993   :  { %v1761_v9 = vadd.f32 %v1759_v5, %v1751_v4 }
0x2995   :  { %2593 = vtanh.f32 %v1761_v9 }
0x299f   :  { %v2594_v10 = vpop.eup %2593 }
0x29a0   :  { %1764 = vrot.lane.b32.xlu0 %v2594_v10, %s2628_s3 }
0x2a12   :  { %v1765_v11 = vpop.permute.xlu0 %1764 }
0x2a13   :  { %v1767_v12 = vmul.f32 %v1765_v11, %v1750_v1 }
0x2a15   :  { %1769 = vrot.lane.b32.xlu1 %v1767_v12, %s2629_s15 }
0x2a87   :  { %v1770_v15 = vpop.permute.xlu1 %1769 }
0x2a88   :  { %2371 = vmatmul.mubr.msk.f32.vlgmr.msra.gmra.mrb[20].mxu1 %vm214_vm6, %v1770_v15 }
0x2b5b   :  { %v1839_v17 = vpop.f32.mrb[20].mxu1 }
0x2b5c   :  { %v1840_v18 = vadd.f32 %v2916_v13, %v1839_v17  ;;  %v2372_v19 = vpop.f32.mrb[21].mxu1 }
0x2b5e   :  { %v1843_v22 = vmul.f32 2.0, %v1840_v18 }
0x2b60   :  { %v1844_v24 = vsel %vm2766_vm5, %v1843_v22, %v1840_v18 }
0x2b61   :  { %v2071_v25 = vmul.f32 -1.442695, %v1844_v24 }
0x2b63   :  { %2595 = vpow2.f32 %v2071_v25 }
0x2b6d   :  { %v2596_v26 = vpop.eup %2595 }
0x2b6e   :  { %v1848_v20 = vadd.f32 1.0, %v2596_v26 }
0x2b70   :  { %2597 = vrcp.f32 %v1848_v20 }
0x2b7a   :  { %v2598_v21 = vpop.eup %2597 }
0x2b7b   :  { %v1851_v29 = vmul.f32 2.0, %v2598_v21 }
0x2b7d   :  { %v2072_v30 = vadd.f32 -1.0, %v1851_v29 }
0x2b7f   :  { %v1853_v31 = vsel %vm2766_vm5, %v2072_v30, %v2598_v21 }
0x2b80   :  { %1856 = vrot.lane.b32.xlu0 %v1853_v31, %s2628_s3  ;;  %v1854_v33 = vmul.f32 %v1853_v31, %v1761_v9 }
0x2bf2   :  { %v1857_v32 = vpop.permute.xlu0 %1856 }
0x2bf3   :  { %v1859_v13 = vmul.f32 %v1857_v32, %v1853_v31 }
0x2bf5   :  { %1861 = vrot.lane.b32.xlu1 %v1859_v13, %s2629_s15 }
0x2c67   :  { %v1862_v34 = vpop.permute.xlu1 %1861 }
0x2c68   :  { %v1864_v6 = vadd.f32 %v1862_v34, %v1854_v33 }
0x2c6a   :  { %2599 = vtanh.f32 %v1864_v6 }
0x2c74   :  { %v2600_v16 = vpop.eup %2599 }
0x2c75   :  { %1867 = vrot.lane.b32.xlu0 %v2600_v16, %s2628_s3  ;;  %s2005_s3 = sshll.u32 %s2630_s7, 4  ;;  %s2006_s3 = int_to_ptr.vmem [resolvable:$true] %s2005_s3 }
0x2c76   :  { %p2606_p1 = scmp.lt.s32.totalorder %s2006_s3, %s2006_s3 }
0x2ce7   :  { %v1868_v41 = vpop.permute.xlu0 %1867 }
0x2ce8   :  { %v1870_v59 = vmul.f32 %v1868_v41, %v1853_v31 }
0x2cea   :  { %1878 = vrot.lane.b32.xlu1 %v1870_v59, %s2629_s15  ;;  %s2601_s15 = scalar_lea.vmem %s2006_s3, 128 }
0x2ceb   :  { %p2602_p0 = scmp.ne.s32.totalorder %s2006_s3, %s2601_s15  ;;  %p2607_p2 = scmp.lt.s32.totalorder %s2601_s15, %s2601_s15 }
0x2ced   :  { %p2608_p3 = por %p2607_p2, %p2606_p1 }
0x2cef   :  { %p2609_p4 = pnand %p2608_p3, %p2602_p0 }
0x2d5c   :  { %v1879_v42 = vpop.permute.xlu1 %1878 }
0x2d5d   :  { %1996 = vst.msk [vmem:[#allocation2] sm:$0xff] %vm214_vm6, %v1879_v42  ;;  %2381 = vmatprep.mubr.msk.f32.mxu0 %vm214_vm6, %v1879_v42 }
0x2d5e   :  { %2382 = vmatmul.mubr.msk.f32.vlgmr.msra.gmra.mrb[18].mxu0 %vm214_vm6, %v1770_v15 }
0x2d5f   :  { %2384 = vmatprep.mubr.msk.f32.mxu0 %vm214_vm6, %v3044_v51 }
0x2d62   :  { %2385 = vmatmul.mubr.msk.f32.gmra.mrb[20].mxu0 %vm214_vm6, %v3026_v35 }
0x2d63   :  { %2387 = vmatprep.mubr.msk.f32.mxu0 %vm214_vm6, %v3008_v7 }
0x2d66   :  { %2388 = vmatmul.mubr.msk.f32.gmra.mrb[22].mxu0 %vm214_vm6, %v2989_v47 }
0x2d67   :  { %2390 = vmatprep.mubr.msk.f32.mxu0 %vm214_vm6, %v2970_v27 }
0x2d6a   :  { %2391 = vmatmul.mubr.msk.f32.gmra.mrb[24].mxu0 %vm214_vm6, %v2951_v0 }
0x2d6b   :  { %2612 = shalt.err (!%p2609_p4)
}
0x2d6c   :  { %s2613_s1 = scalar_lea.hbm %s3151_s10, 128 }
0x2d6d   :  { %p2614_p5 = scmp.ne.s32.totalorder %s3151_s10, %s2613_s1  ;;  %p2617_p6 = scmp.lt.u32.totalorder %s2613_s1, %s3151_s10 }
0x2d6f   :  { %p2619_p7 = pnand %p2617_p6, %p2614_p5 }
0x2d71   :  { %2622 = shalt.err (!%p2619_p7)
}
0x2d72   :  { %2008 = dma.vmem_to_hbm [thread:$0]  %s2006_s3, 128, %s3151_s10, [#allocation3]   ;;  %v2073_v0 = vld [vmem:[%s3149_s8] ss:$0 sm:$0xff] }
0x2e31   :  { %v2383_v27 = vpop.f32.mrb[18].mxu0 }
0x2e32   :  { %v1954_v47 = vadd.f32 %v2383_v27, %v2073_v0  ;;  %v1948_v7 = vpop.f32.mrb[19].mxu0 }
0x2e33   :  { %v1949_v35 = vadd.f32 %v2073_v0, %v1948_v7 }
0x2e34   :  { %1988 = vst.msk [vmem:[%s3150_s9 + $0x8] sm:$0xff] %vm80_vm1, %v1954_v47 }
0x2e35   :  { %1987 = vst.msk [vmem:[%s3150_s9] sm:$0xff] %vm80_vm1, %v1949_v35  ;;  %v2386_v14 = vpop.f32.mrb[20].mxu0 }
0x2e36   :  { %v1964_v8 = vadd.f32 %v2386_v14, %v2073_v0  ;;  %v1958_v61 = vpop.f32.mrb[21].mxu0 }
0x2e37   :  { %v1959_v43 = vadd.f32 %v2073_v0, %v1958_v61 }
0x2e38   :  { %1990 = vst.msk [vmem:[%s3150_s9 + $0x18] sm:$0xff] %vm80_vm1, %v1964_v8 }
0x2e39   :  { %1989 = vst.msk [vmem:[%s3150_s9 + $0x10] sm:$0xff] %vm80_vm1, %v1959_v43  ;;  %v2389_v44 = vpop.f32.mrb[22].mxu0 }
0x2e3a   :  { %v1974_v45 = vadd.f32 %v2389_v44, %v2073_v0  ;;  %v1968_v46 = vpop.f32.mrb[23].mxu0 }
0x2e3b   :  { %v1969_v48 = vadd.f32 %v2073_v0, %v1968_v46 }
0x2e3c   :  { %1992 = vst.msk [vmem:[%s3150_s9 + $0x28] sm:$0xff] %vm80_vm1, %v1974_v45 }
0x2e3d   :  { %1991 = vst.msk [vmem:[%s3150_s9 + $0x20] sm:$0xff] %vm80_vm1, %v1969_v48  ;;  %v2392_v49 = vpop.f32.mrb[24].mxu0 }
0x2e3e   :  { %v1984_v50 = vadd.f32 %v2392_v49, %v2073_v0  ;;  %v1978_v51 = vpop.f32.mrb[25].mxu0 }
0x2e3f   :  { %v1979_v52 = vadd.f32 %v2073_v0, %v1978_v51 }
0x2e40   :  { %1994 = vst.msk [vmem:[%s3150_s9 + $0x38] sm:$0xff] %vm80_vm1, %v1984_v50 }
0x2e41   :  { %1993 = vst.msk [vmem:[%s3150_s9 + $0x30] sm:$0xff] %vm80_vm1, %v1979_v52 }
0x2e42   :  { %2623 = dma.done.wait [#allocation3], 128  }
0x2e43   :  { %2624 = vsyncadd [#allocation3], 4294967168 }
0x2e44   :  { %2014 = vsyncpa [#allocation3], 1 }

</bundles_post_ra>
